<compile_context>
chip_gen: v7x
topology: tpu7x:2x2x1
jax: 0.10.0
libtpu: 0.0.40
codegen_flags: <defaults>
</compile_context>

<pallas_src>
import functools

import jax
import jax.numpy as jnp
from jax.experimental import pallas as pl
from jax.experimental.pallas import tpu as pltpu


def residual_block_kernel(x_ref, w1_ref, b1_ref, w2_ref, b2_ref, w3_ref, b3_ref,
                          o_ref, pad_ref, col_ref, *, H, W):
    """One batch element per grid step; fully fused bottleneck in VMEM."""
    Cmp = w1_ref.shape[-1]
    Cp = x_ref.shape[-1]
    x = x_ref[0].reshape(H * W, Cp)                     # f32, kept for the residual add

    # ---- conv1 (1x1, BN scale pre-folded into w1) + shift + ReLU -------------------
    y1 = jnp.dot(x.astype(w1_ref.dtype), w1_ref[...],
                 preferred_element_type=jnp.float32)
    y1 = jnp.maximum(y1 + b1_ref[...], 0.0)             # (H*W, Cmp) f32

    # ---- stage y1 into a zero-padded scratch ---------------------------------------
    # Only the 1-pixel border is cleared (cheap), and it is cleared every step so the
    # halo is valid no matter how the batch axis is sharded across cores.  Interior is
    # fully overwritten below.  pad_ref stays f32: its window reads below are sublane-
    # unaligned; the bf16 cast happens on the lane-aligned col_ref stores instead.
    pad_ref[0:1, :, :] = jnp.zeros((1, W + 2, Cmp), pad_ref.dtype)
    pad_ref[H + 1:H + 2, :, :] = jnp.zeros((1, W + 2, Cmp), pad_ref.dtype)
    pad_ref[1:H + 1, 0:1, :] = jnp.zeros((H, 1, Cmp), pad_ref.dtype)
    pad_ref[1:H + 1, W + 1:W + 2, :] = jnp.zeros((H, 1, Cmp), pad_ref.dtype)
    pad_ref[1:H + 1, 1:W + 1, :] = y1.reshape(H, W, Cmp)

    # ---- conv2 (3x3, stride=1, pad=1) as ONE im2col matmul, K = 9*Cmp --------------
    for dy in range(3):
        for dx in range(3):
            t = dy * 3 + dx
            win = pad_ref[dy:dy + H, dx:dx + W, :].reshape(H * W, Cmp)
            col_ref[:, t * Cmp:(t + 1) * Cmp] = win.astype(col_ref.dtype)
    y2 = jnp.dot(col_ref[...], w2_ref[...], preferred_element_type=jnp.float32)
    y2 = jnp.maximum(y2 + b2_ref[...], 0.0)             # (H*W, Cmp) f32

    # ---- conv3 (1x1) + shift, residual add, ReLU -----------------------------------
    y3 = jnp.dot(y2.astype(w3_ref.dtype), w3_ref[...],
                 preferred_element_type=jnp.float32)
    out = jnp.maximum(y3 + b3_ref[...] + x, 0.0)
    o_ref[0] = out.reshape(H, W, o_ref.shape[-1]).astype(o_ref.dtype)


def _round_up(x, m):
    return (x + m - 1) // m * m


def _fold_bn(w_oihw, bn_stats, eps):
    """Fold eval-mode BN (gamma,beta,mean,var) into the conv weight + a shift."""
    gamma, beta, mean, var = bn_stats
    scale = gamma / jnp.sqrt(var + eps)
    w_folded = w_oihw * scale[:, None, None, None]       # scale output channels
    shift = beta - mean * scale
    return w_folded, shift


def residual_block(x_nchw, params, *, compute_dtype=jnp.bfloat16, eps=1e-5):
    N, Cin, H, W = x_nchw.shape
    w1, b1 = _fold_bn(params['w1'], params['bn1'], eps)
    w2, b2 = _fold_bn(params['w2'], params['bn2'], eps)
    w3, b3 = _fold_bn(params['w3'], params['bn3'], eps)
    Cm = w1.shape[0]
    Cout = w3.shape[0]
    assert Cout == Cin, "identity_downsample=None requires in_channels == 4*intermediate"

    LANE = 128
    Cp, Cmp, Cop = (_round_up(c, LANE) for c in (Cin, Cm, Cout))
    assert Cop == Cp

    # NCHW -> NHWC, zero-pad channels to the lane multiple.
    x = jnp.transpose(x_nchw, (0, 2, 3, 1))
    x = jnp.pad(x, ((0, 0), (0, 0), (0, 0), (0, Cp - Cin)))

    # conv1: (Cm,Cin,1,1) -> (Cin,Cm), padded to (Cp,Cmp), bf16
    w1m = jnp.pad(w1[:, :, 0, 0].T, ((0, Cp - Cin), (0, Cmp - Cm))).astype(compute_dtype)
    b1m = jnp.pad(b1, (0, Cmp - Cm)).reshape(1, Cmp).astype(jnp.float32)
    # conv2: (Cm,Cm,3,3) -> (ky,kx,ci,co) -> (9,Cm,Cm) -> padded -> (9*Cmp, Cmp), bf16
    w2m = jnp.transpose(w2, (2, 3, 1, 0)).reshape(9, Cm, Cm)
    w2m = jnp.pad(w2m, ((0, 0), (0, Cmp - Cm), (0, Cmp - Cm)))
    w2m = w2m.reshape(9 * Cmp, Cmp).astype(compute_dtype)
    b2m = jnp.pad(b2, (0, Cmp - Cm)).reshape(1, Cmp).astype(jnp.float32)
    # conv3: (Cout,Cm,1,1) -> (Cm,Cout), padded to (Cmp,Cop), bf16
    w3m = jnp.pad(w3[:, :, 0, 0].T, ((0, Cmp - Cm), (0, Cop - Cout))).astype(compute_dtype)
    b3m = jnp.pad(b3, (0, Cop - Cout)).reshape(1, Cop).astype(jnp.float32)

    kernel = functools.partial(residual_block_kernel, H=H, W=W)

    out = pl.pallas_call(
        kernel,
        out_shape=jax.ShapeDtypeStruct((N, H, W, Cop), x_nchw.dtype),
        grid_spec=pltpu.PrefetchScalarGridSpec(
            num_scalar_prefetch=0,
            grid=(N,),
            in_specs=[
                pl.BlockSpec((1, H, W, Cp), lambda n: (n, 0, 0, 0)),   # x
                pl.BlockSpec((Cp, Cmp), lambda n: (0, 0)),             # w1 (BN folded)
                pl.BlockSpec((1, Cmp), lambda n: (0, 0)),              # shift1
                pl.BlockSpec((9 * Cmp, Cmp), lambda n: (0, 0)),        # w2 im2col layout
                pl.BlockSpec((1, Cmp), lambda n: (0, 0)),              # shift2
                pl.BlockSpec((Cmp, Cop), lambda n: (0, 0)),            # w3
                pl.BlockSpec((1, Cop), lambda n: (0, 0)),              # shift3
            ],
            out_specs=pl.BlockSpec((1, H, W, Cop), lambda n: (n, 0, 0, 0)),
            scratch_shapes=[
                pltpu.VMEM((H + 2, W + 2, Cmp), jnp.float32),          # zero-padded y1
                pltpu.VMEM((H * W, 9 * Cmp), compute_dtype),           # im2col slab
            ],
        ),
        compiler_params=pltpu.CompilerParams(
            dimension_semantics=("parallel",),
            vmem_limit_bytes=32 * 1024 * 1024,
        ),
    )(x, w1m, b1m, w2m, b2m, w3m, b3m)

    out = out[..., :Cout]                                 # drop channel padding
    return jnp.transpose(out, (0, 3, 1, 2))               # NHWC -> NCHW


def init_params(key, in_channels, intermediate_channels):
    """Deterministic synthetic parameters in PyTorch layout (OIHW conv + BN stats)."""
    ks = jax.random.split(key, 6)
    cm = intermediate_channels
    cout = 4 * cm
    w1 = 0.1 * jax.random.normal(ks[0], (cm, in_channels, 1, 1), jnp.float32)
    w2 = 0.1 * jax.random.normal(ks[1], (cm, cm, 3, 3), jnp.float32)
    w3 = 0.1 * jax.random.normal(ks[2], (cout, cm, 1, 1), jnp.float32)

    def bn(k, c):
        gamma = 1.0 + 0.1 * jax.random.normal(jax.random.fold_in(k, 0), (c,), jnp.float32)
        beta = 0.1 * jax.random.normal(jax.random.fold_in(k, 1), (c,), jnp.float32)
        mean = 0.05 * jax.random.normal(jax.random.fold_in(k, 2), (c,), jnp.float32)
        var = jnp.abs(1.0 + 0.1 * jax.random.normal(jax.random.fold_in(k, 3), (c,), jnp.float32))
        return (gamma, beta, mean, var)

    return dict(w1=w1, w2=w2, w3=w3,
                bn1=bn(ks[3], cm), bn2=bn(ks[4], cm), bn3=bn(ks[5], cout))


def ref_forward(x, p, eps=1e-5):
    """Pure-JAX f32 reference with the exact module semantics (eval-mode BN)."""
    def bn(y, stats):
        g, b, m, v = stats
        inv = g / jnp.sqrt(v + eps)
        return (y - m[None, :, None, None]) * inv[None, :, None, None] + b[None, :, None, None]

    def conv(y, w, pad=0):
        return jax.lax.conv_general_dilated(
            y, w, window_strides=(1, 1), padding=[(pad, pad), (pad, pad)],
            dimension_numbers=('NCHW', 'OIHW', 'NCHW'))

    identity = x
    y = jax.nn.relu(bn(conv(x, p['w1']), p['bn1']))
    y = jax.nn.relu(bn(conv(y, p['w2'], pad=1), p['bn2']))
    y = bn(conv(y, p['w3']), p['bn3'])
    return jax.nn.relu(y + identity)


if __name__ == "__main__":
    key = jax.random.PRNGKey(0)
    intermediate_channels = 8
    in_channels = 4 * intermediate_channels              # 32, so the identity add is legal
    N, H, W = 2, 16, 16

    kx, kp = jax.random.split(key)
    x = jax.random.normal(kx, (N, in_channels, H, W), jnp.float32)
    params = init_params(kp, in_channels, intermediate_channels)

    out = jax.jit(residual_block)(x, params)
    out = jax.block_until_ready(out)

    ref = ref_forward(x, params)
    assert out.shape == (N, in_channels, H, W)
    max_err = float(jnp.max(jnp.abs(out - ref)))
    # bf16 matmul inputs (f32 accumulation) -> small numerical noise vs the f32 reference
    assert jnp.allclose(out, ref, rtol=5e-2, atol=5e-2), f"max abs err = {max_err}"

    print("KERNEL_OK")
</pallas_src>

<mosaic_0001>
module attributes {stable_mosaic.version = 11 : i64} {
  func.func @residual_block_kernel(%arg0: i32, %arg1: memref<1x16x16x128xf32, #tpu.memory_space<vmem>>, %arg2: memref<128x128xbf16, #tpu.memory_space<vmem>>, %arg3: memref<1x128xf32, #tpu.memory_space<vmem>>, %arg4: memref<1152x128xbf16, #tpu.memory_space<vmem>>, %arg5: memref<1x128xf32, #tpu.memory_space<vmem>>, %arg6: memref<128x128xbf16, #tpu.memory_space<vmem>>, %arg7: memref<1x128xf32, #tpu.memory_space<vmem>>, %arg8: memref<1x16x16x128xf32, #tpu.memory_space<vmem>>, %arg9: memref<18x18x128xf32, #tpu.memory_space<vmem>>, %arg10: memref<256x1152xbf16, #tpu.memory_space<vmem>>) attributes {dimension_semantics = [#tpu.dimension_semantics<parallel>], iteration_bounds = array<i64: 2>, scalar_prefetch = 0 : i64, scratch_operands = 2 : i64, tpu.core_type = #tpu.core_type<tc>, window_params = [{transform_indices = @transform_0, window_bounds = array<i64: 1, 16, 16, 128>}, {pipeline_mode = #tpu.pipeline_mode<synchronous>, transform_indices = @transform_1, window_bounds = array<i64: 128, 128>}, {pipeline_mode = #tpu.pipeline_mode<synchronous>, transform_indices = @transform_2, window_bounds = array<i64: 1, 128>}, {pipeline_mode = #tpu.pipeline_mode<synchronous>, transform_indices = @transform_3, window_bounds = array<i64: 1152, 128>}, {pipeline_mode = #tpu.pipeline_mode<synchronous>, transform_indices = @transform_4, window_bounds = array<i64: 1, 128>}, {pipeline_mode = #tpu.pipeline_mode<synchronous>, transform_indices = @transform_5, window_bounds = array<i64: 128, 128>}, {pipeline_mode = #tpu.pipeline_mode<synchronous>, transform_indices = @transform_6, window_bounds = array<i64: 1, 128>}, {transform_indices = @transform_7, window_bounds = array<i64: 1, 16, 16, 128>}]} {
    %c0 = arith.constant 0 : index
    %c0_0 = arith.constant 0 : index
    %c0_1 = arith.constant 0 : index
    %c0_2 = arith.constant 0 : index
    %0 = vector.load %arg1[%c0, %c0_0, %c0_1, %c0_2] : memref<1x16x16x128xf32, #tpu.memory_space<vmem>>, vector<1x16x16x128xf32>
    %1 = vector.shape_cast %0 : vector<1x16x16x128xf32> to vector<16x16x128xf32>
    %2 = vector.shape_cast %1 : vector<16x16x128xf32> to vector<256x128xf32>
    %3 = arith.truncf %2 : vector<256x128xf32> to vector<256x128xbf16>
    %c0_3 = arith.constant 0 : index
    %c0_4 = arith.constant 0 : index
    %4 = vector.load %arg2[%c0_3, %c0_4] : memref<128x128xbf16, #tpu.memory_space<vmem>>, vector<128x128xbf16>
    %cst = arith.constant dense<0.000000e+00> : vector<256x128xf32>
    %5 = tpu.matmul %3, %4, %cst {dimension_numbers = #tpu.dot_dimension_numbers<[1], [0], [0], [1], [0, 0, 1, 1], [], []>} : vector<256x128xbf16>, vector<128x128xbf16>, vector<256x128xf32> -> vector<256x128xf32>
    %c0_5 = arith.constant 0 : index
    %c0_6 = arith.constant 0 : index
    %6 = vector.load %arg3[%c0_5, %c0_6] : memref<1x128xf32, #tpu.memory_space<vmem>>, vector<1x128xf32>
    %7 = vector.broadcast %6 : vector<1x128xf32> to vector<256x128xf32>
    %8 = arith.addf %5, %7 : vector<256x128xf32>
    %cst_7 = arith.constant 0.000000e+00 : f32
    %9 = vector.broadcast %cst_7 : f32 to vector<256x128xf32>
    %10 = arith.maximumf %8, %9 : vector<256x128xf32>
    %cst_8 = arith.constant 0.000000e+00 : f32
    %11 = vector.broadcast %cst_8 : f32 to vector<1x18x128xf32>
    %c0_9 = arith.constant 0 : index
    %c0_10 = arith.constant 0 : index
    %c0_11 = arith.constant 0 : index
    %12 = vector.load %arg9[%c0_9, %c0_10, %c0_11] : memref<18x18x128xf32, #tpu.memory_space<vmem>>, vector<1x18x128xf32>
    tpu.vector_store %arg9[%c0_9, %c0_10, %c0_11], %11 {strides = array<i32>} : memref<18x18x128xf32, #tpu.memory_space<vmem>>, vector<1x18x128xf32>,
    %cst_12 = arith.constant 0.000000e+00 : f32
    %13 = vector.broadcast %cst_12 : f32 to vector<1x18x128xf32>
    %c17 = arith.constant 17 : index
    %c0_13 = arith.constant 0 : index
    %c0_14 = arith.constant 0 : index
    %14 = vector.load %arg9[%c17, %c0_13, %c0_14] : memref<18x18x128xf32, #tpu.memory_space<vmem>>, vector<1x18x128xf32>
    tpu.vector_store %arg9[%c17, %c0_13, %c0_14], %13 {strides = array<i32>} : memref<18x18x128xf32, #tpu.memory_space<vmem>>, vector<1x18x128xf32>,
    %cst_15 = arith.constant 0.000000e+00 : f32
    %15 = vector.broadcast %cst_15 : f32 to vector<16x1x128xf32>
    %c1 = arith.constant 1 : index
    %c0_16 = arith.constant 0 : index
    %c0_17 = arith.constant 0 : index
    %16 = vector.load %arg9[%c1, %c0_16, %c0_17] : memref<18x18x128xf32, #tpu.memory_space<vmem>>, vector<16x1x128xf32>
    tpu.vector_store %arg9[%c1, %c0_16, %c0_17], %15 {strides = array<i32>} : memref<18x18x128xf32, #tpu.memory_space<vmem>>, vector<16x1x128xf32>,
    %cst_18 = arith.constant 0.000000e+00 : f32
    %17 = vector.broadcast %cst_18 : f32 to vector<16x1x128xf32>
    %c1_19 = arith.constant 1 : index
    %c17_20 = arith.constant 17 : index
    %c0_21 = arith.constant 0 : index
    %18 = vector.load %arg9[%c1_19, %c17_20, %c0_21] : memref<18x18x128xf32, #tpu.memory_space<vmem>>, vector<16x1x128xf32>
    tpu.vector_store %arg9[%c1_19, %c17_20, %c0_21], %17 {strides = array<i32>} : memref<18x18x128xf32, #tpu.memory_space<vmem>>, vector<16x1x128xf32>,
    %19 = vector.shape_cast %10 : vector<256x128xf32> to vector<16x16x128xf32>
    %c1_22 = arith.constant 1 : index
    %c1_23 = arith.constant 1 : index
    %c0_24 = arith.constant 0 : index
    %20 = vector.load %arg9[%c1_22, %c1_23, %c0_24] : memref<18x18x128xf32, #tpu.memory_space<vmem>>, vector<16x16x128xf32>
    tpu.vector_store %arg9[%c1_22, %c1_23, %c0_24], %19 {strides = array<i32>} : memref<18x18x128xf32, #tpu.memory_space<vmem>>, vector<16x16x128xf32>,
    %c0_25 = arith.constant 0 : index
    %c0_26 = arith.constant 0 : index
    %c0_27 = arith.constant 0 : index
    %21 = vector.load %arg9[%c0_25, %c0_26, %c0_27] : memref<18x18x128xf32, #tpu.memory_space<vmem>>, vector<16x16x128xf32>
    %22 = vector.shape_cast %21 : vector<16x16x128xf32> to vector<256x128xf32>
    %23 = arith.truncf %22 : vector<256x128xf32> to vector<256x128xbf16>
    %c0_28 = arith.constant 0 : index
    %c0_29 = arith.constant 0 : index
    %24 = vector.load %arg10[%c0_28, %c0_29] : memref<256x1152xbf16, #tpu.memory_space<vmem>>, vector<256x128xbf16>
    tpu.vector_store %arg10[%c0_28, %c0_29], %23 {strides = array<i32>} : memref<256x1152xbf16, #tpu.memory_space<vmem>>, vector<256x128xbf16>,
    %c0_30 = arith.constant 0 : index
    %c1_31 = arith.constant 1 : index
    %c0_32 = arith.constant 0 : index
    %25 = vector.load %arg9[%c0_30, %c1_31, %c0_32] : memref<18x18x128xf32, #tpu.memory_space<vmem>>, vector<16x16x128xf32>
    %26 = vector.shape_cast %25 : vector<16x16x128xf32> to vector<256x128xf32>
    %27 = arith.truncf %26 : vector<256x128xf32> to vector<256x128xbf16>
    %c0_33 = arith.constant 0 : index
    %c128 = arith.constant 128 : index
    %28 = vector.load %arg10[%c0_33, %c128] : memref<256x1152xbf16, #tpu.memory_space<vmem>>, vector<256x128xbf16>
    tpu.vector_store %arg10[%c0_33, %c128], %27 {strides = array<i32>} : memref<256x1152xbf16, #tpu.memory_space<vmem>>, vector<256x128xbf16>,
    %c0_34 = arith.constant 0 : index
    %c2 = arith.constant 2 : index
    %c0_35 = arith.constant 0 : index
    %29 = vector.load %arg9[%c0_34, %c2, %c0_35] : memref<18x18x128xf32, #tpu.memory_space<vmem>>, vector<16x16x128xf32>
    %30 = vector.shape_cast %29 : vector<16x16x128xf32> to vector<256x128xf32>
    %31 = arith.truncf %30 : vector<256x128xf32> to vector<256x128xbf16>
    %c0_36 = arith.constant 0 : index
    %c256 = arith.constant 256 : index
    %32 = vector.load %arg10[%c0_36, %c256] : memref<256x1152xbf16, #tpu.memory_space<vmem>>, vector<256x128xbf16>
    tpu.vector_store %arg10[%c0_36, %c256], %31 {strides = array<i32>} : memref<256x1152xbf16, #tpu.memory_space<vmem>>, vector<256x128xbf16>,
    %c1_37 = arith.constant 1 : index
    %c0_38 = arith.constant 0 : index
    %c0_39 = arith.constant 0 : index
    %33 = vector.load %arg9[%c1_37, %c0_38, %c0_39] : memref<18x18x128xf32, #tpu.memory_space<vmem>>, vector<16x16x128xf32>
    %34 = vector.shape_cast %33 : vector<16x16x128xf32> to vector<256x128xf32>
    %35 = arith.truncf %34 : vector<256x128xf32> to vector<256x128xbf16>
    %c0_40 = arith.constant 0 : index
    %c384 = arith.constant 384 : index
    %36 = vector.load %arg10[%c0_40, %c384] : memref<256x1152xbf16, #tpu.memory_space<vmem>>, vector<256x128xbf16>
    tpu.vector_store %arg10[%c0_40, %c384], %35 {strides = array<i32>} : memref<256x1152xbf16, #tpu.memory_space<vmem>>, vector<256x128xbf16>,
    %c1_41 = arith.constant 1 : index
    %c1_42 = arith.constant 1 : index
    %c0_43 = arith.constant 0 : index
    %37 = vector.load %arg9[%c1_41, %c1_42, %c0_43] : memref<18x18x128xf32, #tpu.memory_space<vmem>>, vector<16x16x128xf32>
    %38 = vector.shape_cast %37 : vector<16x16x128xf32> to vector<256x128xf32>
    %39 = arith.truncf %38 : vector<256x128xf32> to vector<256x128xbf16>
    %c0_44 = arith.constant 0 : index
    %c512 = arith.constant 512 : index
    %40 = vector.load %arg10[%c0_44, %c512] : memref<256x1152xbf16, #tpu.memory_space<vmem>>, vector<256x128xbf16>
    tpu.vector_store %arg10[%c0_44, %c512], %39 {strides = array<i32>} : memref<256x1152xbf16, #tpu.memory_space<vmem>>, vector<256x128xbf16>,
    %c1_45 = arith.constant 1 : index
    %c2_46 = arith.constant 2 : index
    %c0_47 = arith.constant 0 : index
    %41 = vector.load %arg9[%c1_45, %c2_46, %c0_47] : memref<18x18x128xf32, #tpu.memory_space<vmem>>, vector<16x16x128xf32>
    %42 = vector.shape_cast %41 : vector<16x16x128xf32> to vector<256x128xf32>
    %43 = arith.truncf %42 : vector<256x128xf32> to vector<256x128xbf16>
    %c0_48 = arith.constant 0 : index
    %c640 = arith.constant 640 : index
    %44 = vector.load %arg10[%c0_48, %c640] : memref<256x1152xbf16, #tpu.memory_space<vmem>>, vector<256x128xbf16>
    tpu.vector_store %arg10[%c0_48, %c640], %43 {strides = array<i32>} : memref<256x1152xbf16, #tpu.memory_space<vmem>>, vector<256x128xbf16>,
    %c2_49 = arith.constant 2 : index
    %c0_50 = arith.constant 0 : index
    %c0_51 = arith.constant 0 : index
    %45 = vector.load %arg9[%c2_49, %c0_50, %c0_51] : memref<18x18x128xf32, #tpu.memory_space<vmem>>, vector<16x16x128xf32>
    %46 = vector.shape_cast %45 : vector<16x16x128xf32> to vector<256x128xf32>
    %47 = arith.truncf %46 : vector<256x128xf32> to vector<256x128xbf16>
    %c0_52 = arith.constant 0 : index
    %c768 = arith.constant 768 : index
    %48 = vector.load %arg10[%c0_52, %c768] : memref<256x1152xbf16, #tpu.memory_space<vmem>>, vector<256x128xbf16>
    tpu.vector_store %arg10[%c0_52, %c768], %47 {strides = array<i32>} : memref<256x1152xbf16, #tpu.memory_space<vmem>>, vector<256x128xbf16>,
    %c2_53 = arith.constant 2 : index
    %c1_54 = arith.constant 1 : index
    %c0_55 = arith.constant 0 : index
    %49 = vector.load %arg9[%c2_53, %c1_54, %c0_55] : memref<18x18x128xf32, #tpu.memory_space<vmem>>, vector<16x16x128xf32>
    %50 = vector.shape_cast %49 : vector<16x16x128xf32> to vector<256x128xf32>
    %51 = arith.truncf %50 : vector<256x128xf32> to vector<256x128xbf16>
    %c0_56 = arith.constant 0 : index
    %c896 = arith.constant 896 : index
    %52 = vector.load %arg10[%c0_56, %c896] : memref<256x1152xbf16, #tpu.memory_space<vmem>>, vector<256x128xbf16>
    tpu.vector_store %arg10[%c0_56, %c896], %51 {strides = array<i32>} : memref<256x1152xbf16, #tpu.memory_space<vmem>>, vector<256x128xbf16>,
    %c2_57 = arith.constant 2 : index
    %c2_58 = arith.constant 2 : index
    %c0_59 = arith.constant 0 : index
    %53 = vector.load %arg9[%c2_57, %c2_58, %c0_59] : memref<18x18x128xf32, #tpu.memory_space<vmem>>, vector<16x16x128xf32>
    %54 = vector.shape_cast %53 : vector<16x16x128xf32> to vector<256x128xf32>
    %55 = arith.truncf %54 : vector<256x128xf32> to vector<256x128xbf16>
    %c0_60 = arith.constant 0 : index
    %c1024 = arith.constant 1024 : index
    %56 = vector.load %arg10[%c0_60, %c1024] : memref<256x1152xbf16, #tpu.memory_space<vmem>>, vector<256x128xbf16>
    tpu.vector_store %arg10[%c0_60, %c1024], %55 {strides = array<i32>} : memref<256x1152xbf16, #tpu.memory_space<vmem>>, vector<256x128xbf16>,
    %c0_61 = arith.constant 0 : index
    %c0_62 = arith.constant 0 : index
    %57 = vector.load %arg10[%c0_61, %c0_62] : memref<256x1152xbf16, #tpu.memory_space<vmem>>, vector<256x1152xbf16>
    %c0_63 = arith.constant 0 : index
    %c0_64 = arith.constant 0 : index
    %58 = vector.load %arg4[%c0_63, %c0_64] : memref<1152x128xbf16, #tpu.memory_space<vmem>>, vector<1152x128xbf16>
    %cst_65 = arith.constant dense<0.000000e+00> : vector<256x128xf32>
    %59 = tpu.matmul %57, %58, %cst_65 {dimension_numbers = #tpu.dot_dimension_numbers<[1], [0], [0], [1], [0, 0, 1, 1], [], []>} : vector<256x1152xbf16>, vector<1152x128xbf16>, vector<256x128xf32> -> vector<256x128xf32>
    %c0_66 = arith.constant 0 : index
    %c0_67 = arith.constant 0 : index
    %60 = vector.load %arg5[%c0_66, %c0_67] : memref<1x128xf32, #tpu.memory_space<vmem>>, vector<1x128xf32>
    %61 = vector.broadcast %60 : vector<1x128xf32> to vector<256x128xf32>
    %62 = arith.addf %59, %61 : vector<256x128xf32>
    %cst_68 = arith.constant 0.000000e+00 : f32
    %63 = vector.broadcast %cst_68 : f32 to vector<256x128xf32>
    %64 = arith.maximumf %62, %63 : vector<256x128xf32>
    %65 = arith.truncf %64 : vector<256x128xf32> to vector<256x128xbf16>
    %c0_69 = arith.constant 0 : index
    %c0_70 = arith.constant 0 : index
    %66 = vector.load %arg6[%c0_69, %c0_70] : memref<128x128xbf16, #tpu.memory_space<vmem>>, vector<128x128xbf16>
    %cst_71 = arith.constant dense<0.000000e+00> : vector<256x128xf32>
    %67 = tpu.matmul %65, %66, %cst_71 {dimension_numbers = #tpu.dot_dimension_numbers<[1], [0], [0], [1], [0, 0, 1, 1], [], []>} : vector<256x128xbf16>, vector<128x128xbf16>, vector<256x128xf32> -> vector<256x128xf32>
    %c0_72 = arith.constant 0 : index
    %c0_73 = arith.constant 0 : index
    %68 = vector.load %arg7[%c0_72, %c0_73] : memref<1x128xf32, #tpu.memory_space<vmem>>, vector<1x128xf32>
    %69 = vector.broadcast %68 : vector<1x128xf32> to vector<256x128xf32>
    %70 = arith.addf %67, %69 : vector<256x128xf32>
    %71 = arith.addf %70, %2 : vector<256x128xf32>
    %cst_74 = arith.constant 0.000000e+00 : f32
    %72 = vector.broadcast %cst_74 : f32 to vector<256x128xf32>
    %73 = arith.maximumf %71, %72 : vector<256x128xf32>
    %74 = vector.shape_cast %73 : vector<256x128xf32> to vector<16x16x128xf32>
    %c0_75 = arith.constant 0 : index
    %c0_76 = arith.constant 0 : index
    %c0_77 = arith.constant 0 : index
    %c0_78 = arith.constant 0 : index
    %75 = vector.load %arg8[%c0_75, %c0_76, %c0_77, %c0_78] : memref<1x16x16x128xf32, #tpu.memory_space<vmem>>, vector<1x16x16x128xf32>
    %76 = vector.shape_cast %75 : vector<1x16x16x128xf32> to vector<16x16x128xf32>
    %77 = vector.shape_cast %74 : vector<16x16x128xf32> to vector<1x16x16x128xf32>
    tpu.vector_store %arg8[%c0_75, %c0_76, %c0_77, %c0_78], %77 {strides = array<i32>} : memref<1x16x16x128xf32, #tpu.memory_space<vmem>>, vector<1x16x16x128xf32>,
    return
  }
  func.func @transform_0(%arg0: i32) -> (i32, i32, i32, i32) {
    %c0_i32 = arith.constant 0 : i32
    %c0_i32_0 = arith.constant 0 : i32
    %c0_i32_1 = arith.constant 0 : i32
    %c0_i32_2 = arith.constant 0 : i32
    return %arg0, %c0_i32, %c0_i32_0, %c0_i32_1 : i32, i32, i32, i32
  }
  func.func @transform_1(%arg0: i32) -> (i32, i32) {
    %c0_i32 = arith.constant 0 : i32
    %c0_i32_0 = arith.constant 0 : i32
    %c0_i32_1 = arith.constant 0 : i32
    return %c0_i32, %c0_i32_0 : i32, i32
  }
  func.func @transform_2(%arg0: i32) -> (i32, i32) {
    %c0_i32 = arith.constant 0 : i32
    %c0_i32_0 = arith.constant 0 : i32
    %c0_i32_1 = arith.constant 0 : i32
    return %c0_i32, %c0_i32_0 : i32, i32
  }
  func.func @transform_3(%arg0: i32) -> (i32, i32) {
    %c0_i32 = arith.constant 0 : i32
    %c0_i32_0 = arith.constant 0 : i32
    %c0_i32_1 = arith.constant 0 : i32
    return %c0_i32, %c0_i32_0 : i32, i32
  }
  func.func @transform_4(%arg0: i32) -> (i32, i32) {
    %c0_i32 = arith.constant 0 : i32
    %c0_i32_0 = arith.constant 0 : i32
    %c0_i32_1 = arith.constant 0 : i32
    return %c0_i32, %c0_i32_0 : i32, i32
  }
  func.func @transform_5(%arg0: i32) -> (i32, i32) {
    %c0_i32 = arith.constant 0 : i32
    %c0_i32_0 = arith.constant 0 : i32
    %c0_i32_1 = arith.constant 0 : i32
    return %c0_i32, %c0_i32_0 : i32, i32
  }
  func.func @transform_6(%arg0: i32) -> (i32, i32) {
    %c0_i32 = arith.constant 0 : i32
    %c0_i32_0 = arith.constant 0 : i32
    %c0_i32_1 = arith.constant 0 : i32
    return %c0_i32, %c0_i32_0 : i32, i32
  }
  func.func @transform_7(%arg0: i32) -> (i32, i32, i32, i32) {
    %c0_i32 = arith.constant 0 : i32
    %c0_i32_0 = arith.constant 0 : i32
    %c0_i32_1 = arith.constant 0 : i32
    %c0_i32_2 = arith.constant 0 : i32
    return %arg0, %c0_i32, %c0_i32_0, %c0_i32_1 : i32, i32, i32, i32
  }
}

</mosaic_0001>

<bundles_post_ra>
// kernel: residual_block.1
= control target key start
LH: loop header
LB: loop body
LE: loop exit
PB: predicated region body
PF: predicated region fallthrough
CT: control target
= control target key end

     0   :  { %s4168_s24 = smov 0   ;;  %s5084_s0 = inlined_call_operand.vmem [shape: f32[2,16,16,128], index: 0, kind: input, shape index: {}]   ;;  %s5085_s1 = inlined_call_operand.vmem [shape: bf16[128,128], index: 1, kind: input, shape index: {}]   ;;  %s5086_s2 = inlined_call_operand.vmem [shape: f32[1,128], index: 2, kind: input, shape index: {}]   ;;  %s5087_s3 = inlined_call_operand.vmem [shape: bf16[1152,128], index: 3, kind: input, shape index: {}]   ;;  %s5088_s4 = inlined_call_operand.vmem [shape: f32[1,128], index: 4, kind: input, shape index: {}]   ;;  %s5089_s5 = inlined_call_operand.vmem [shape: bf16[128,128], index: 5, kind: input, shape index: {}]   ;;  %s5090_s6 = inlined_call_operand.vmem [shape: f32[1,128], index: 6, kind: input, shape index: {}]   ;;  %s5091_s7 = inlined_call_operand.vmem [shape: f32[2,16,16,128], index: 7, kind: output, shape index: {}]  }
   0x1 LB: > { %s3204_s25 = sadd.s32 4294967295, %s4124_s24   ;;  %p3208_p0 = scmp.ge.s32.totalorder %s4124_s24, 1  ;;  %s4124_s24 = sphi %s4168_s24, %s17_s24  }
   0x2   : > { %p237_p1 = scmp.lt.s32.totalorder %s4124_s24, 3 }
   0x4   : > { %p238_p2 = pnand %p3208_p0, %p237_p1 }
   0x5   : > { %v3997_v0 = vld [vmem:[%s5085_s1] sm:$0xff] (!%p238_p2)   ;;  %p269_p3 = scmp.lt.s32.totalorder (!%p238_p2), %s3204_s25, 1  ;;  %v3998_v1 = vld [vmem:[%s5085_s1 + $0x8] sm:$0xff] (!%p238_p2)   ;;  %v3999_v2 = vld [vmem:[%s5085_s1 + $0x10] sm:$0xff] (!%p238_p2)  }
   0x6   : > { %241 = sbr.rel (%p238_p2) target bundleno = 1015 (0x3f7), region = 48  ;;  %3828 = vmatprep.subr.bf16.mxu0 (!%p238_p2), %v3997_v0  ;;  %3972 = vmatprep.subr.bf16.mxu1 (!%p238_p2), %v3997_v0  ;;  %v4000_v3 = vld [vmem:[%s5085_s1 + $0x18] sm:$0xff] (!%p238_p2)   ;;  %v4001_v7 = vld [vmem:[%s5085_s1 + $0x20] sm:$0xff] (!%p238_p2)   ;;  %v4002_v11 = vld [vmem:[%s5085_s1 + $0x28] sm:$0xff] (!%p238_p2)  }
   0x7   : > { %3829 = vmatpush3.bf16.msra.mxu0 (!%p238_p2), %v3997_v0  ;;  %3980 = vmatpush3.bf16.msra.mxu1 (!%p238_p2), %v3997_v0  ;;  %v4003_v12 = vld [vmem:[%s5085_s1 + $0x30] sm:$0xff] (!%p238_p2)   ;;  %v4004_v13 = vld [vmem:[%s5085_s1 + $0x38] sm:$0xff] (!%p238_p2)   ;;  %v4011_v22 = vld [vmem:[%s5087_s3 + $0xc0] sm:$0xff] (!%p238_p2)  }
   0x8   : > { %3830 = vmatprep.subr.bf16.mxu0 (!%p238_p2), %v3998_v1  ;;  %3973 = vmatprep.subr.bf16.mxu1 (!%p238_p2), %v3998_v1  ;;  %v4005_v23 = vld [vmem:[%s5087_s3 + $0x40] sm:$0xff] (!%p238_p2)   ;;  %v4007_v29 = vld [vmem:[%s5087_s3 + $0x48] sm:$0xff] (!%p238_p2)   ;;  %v4009_v41 = vld [vmem:[%s5087_s3 + $0x50] sm:$0xff] (!%p238_p2)  }
   0x9   : > { %v4006_v27 = vld [vmem:[%s5087_s3] sm:$0xff] (!%p238_p2)   ;;  %v4008_v37 = vld [vmem:[%s5087_s3 + $0x8] sm:$0xff] (!%p238_p2)   ;;  %v4019_v43 = vld [vmem:[%s5087_s3 + $0xd0] sm:$0xff] (!%p238_p2)  }
   0xa   : > { %v4013_v32 = vld [vmem:[%s5087_s3 + $0x80] sm:$0xff] (!%p238_p2)   ;;  %v4015_v38 = vld [vmem:[%s5087_s3 + $0xc8] sm:$0xff] (!%p238_p2)   ;;  %v4010_v45 = vld [vmem:[%s5087_s3 + $0x10] sm:$0xff] (!%p238_p2)  }
   0xb   : > { %3831 = vmatpush3.bf16.msra.mxu0 (!%p238_p2), %v3998_v1  ;;  %3981 = vmatpush3.bf16.msra.mxu1 (!%p238_p2), %v3998_v1  ;;  %v4017_v42 = vld [vmem:[%s5087_s3 + $0x88] sm:$0xff] (!%p238_p2)   ;;  %v4012_v48 = vld [vmem:[%s5087_s3 + $0x58] sm:$0xff] (!%p238_p2)   ;;  %v4021_v49 = vld [vmem:[%s5087_s3 + $0x90] sm:$0xff] (!%p238_p2)  }
   0xc   : > { %3832 = vmatprep.subr.bf16.mxu0 (!%p238_p2), %v3999_v2  ;;  %3974 = vmatprep.subr.bf16.mxu1 (!%p238_p2), %v3999_v2  ;;  %v4023_v51 = vld [vmem:[%s5087_s3 + $0xd8] sm:$0xff] (!%p238_p2)   ;;  %v4016_v61 = vld [vmem:[%s5087_s3 + $0x60] sm:$0xff] (!%p238_p2)  }
   0xd   : > { %s5093_s25 = smov (!%p269_p3, %s3204_s25), 1  ;;  %v4014_v58 = vld [vmem:[%s5087_s3 + $0x18] sm:$0xff]   ;;  %v4018_v63 = vld [vmem:[%s5087_s3 + $0x20] sm:$0xff]  }
   0xe   : > { %s3306_s9 = sshll.u32 %s5093_s25, 8 }
   0xf   : > { %s4193_s12 = scalar_lea.vmem %s5084_s0, %s3306_s9  ;;  %3833 = vmatpush3.bf16.msra.mxu0 %v3999_v2  ;;  %3982 = vmatpush3.bf16.msra.mxu1 %v3999_v2  ;;  %v4020_v2 = vld [vmem:[%s5087_s3 + $0x68] sm:$0xff]   ;;  %s4987_s20 = scalar_lea.vmem %s5091_s7, %s3306_s9 }
  0x10   : > { %v280_v4 = vld [vmem:[%s4193_s12] sm:$0xff]  ;;  %v281_v5 = vld [vmem:[%s4193_s12 + $0x8] sm:$0xff]  ;;  %3834 = vmatprep.subr.bf16.mxu0 %v4000_v3  ;;  %3975 = vmatprep.subr.bf16.mxu1 %v4000_v3  ;;  %v282_v14 = vld [vmem:[%s4193_s12 + $0x10] sm:$0xff] }
  0x11   : > { %v312_v6 = vpack.c.bf16 %v281_v5, %v280_v4  ;;  %v296_v8 = vld [vmem:[%s4193_s12 + $0x80] sm:$0xff]  ;;  %v297_v9 = vld [vmem:[%s4193_s12 + $0x88] sm:$0xff]  ;;  %v283_v15 = vld [vmem:[%s4193_s12 + $0x18] sm:$0xff] }
  0x12   : > { %v320_v10 = vpack.c.bf16 %v297_v9, %v296_v8  ;;  %v284_v16 = vld [vmem:[%s4193_s12 + $0x20] sm:$0xff]  ;;  %v285_v17 = vld [vmem:[%s4193_s12 + $0x28] sm:$0xff]  ;;  %v298_v18 = vld [vmem:[%s4193_s12 + $0x90] sm:$0xff]  ;;  %v313_v24 = vpack.c.bf16 %v283_v15, %v282_v14 }
  0x13   : > { %3844 = vmatprep.mubr.bf16.mxu0 %v312_v6  ;;  %3835 = vmatpush3.bf16.msra.mxu0 %v4000_v3  ;;  %v299_v19 = vld [vmem:[%s4193_s12 + $0x98] sm:$0xff]  ;;  %v300_v20 = vld [vmem:[%s4193_s12 + $0xa0] sm:$0xff]  ;;  %v301_v21 = vld [vmem:[%s4193_s12 + $0xa8] sm:$0xff]  ;;  %v314_v25 = vpack.c.bf16 %v285_v17, %v284_v16 }
  0x14   : > { %3836 = vmatprep.subr.bf16.mxu0 %v4001_v7  ;;  %3983 = vmatpush3.bf16.msra.mxu1 %v4000_v3  ;;  %v321_v26 = vpack.c.bf16 %v299_v19, %v298_v18  ;;  %v322_v28 = vpack.c.bf16 %v301_v21, %v300_v20  ;;  %v286_v30 = vld [vmem:[%s4193_s12 + $0x30] sm:$0xff]  ;;  %v287_v31 = vld [vmem:[%s4193_s12 + $0x38] sm:$0xff]  ;;  %v288_v33 = vld [vmem:[%s4193_s12 + $0x40] sm:$0xff] }
  0x15   : > { %3976 = vmatprep.subr.bf16.mxu1 %v4001_v7  ;;  %3860 = vmatprep.mubr.bf16.mxu1 %v320_v10  ;;  %v289_v34 = vld [vmem:[%s4193_s12 + $0x48] sm:$0xff]  ;;  %v302_v35 = vld [vmem:[%s4193_s12 + $0xb0] sm:$0xff]  ;;  %v303_v36 = vld [vmem:[%s4193_s12 + $0xb8] sm:$0xff]  ;;  %v315_v44 = vpack.c.bf16 %v287_v31, %v286_v30 }
  0x16   : > { %v304_v39 = vld [vmem:[%s4193_s12 + $0xc0] sm:$0xff]  ;;  %v305_v40 = vld [vmem:[%s4193_s12 + $0xc8] sm:$0xff]  ;;  %v316_v46 = vpack.c.bf16 %v289_v34, %v288_v33  ;;  %v323_v47 = vpack.c.bf16 %v303_v36, %v302_v35  ;;  %v290_v52 = vld [vmem:[%s4193_s12 + $0x50] sm:$0xff] }
  0x17   : > { %3837 = vmatpush3.bf16.msra.mxu0 %v4001_v7  ;;  %v324_v50 = vpack.c.bf16 %v305_v40, %v304_v39  ;;  %v291_v53 = vld [vmem:[%s4193_s12 + $0x58] sm:$0xff]  ;;  %v292_v54 = vld [vmem:[%s4193_s12 + $0x60] sm:$0xff]  ;;  %v293_v55 = vld [vmem:[%s4193_s12 + $0x68] sm:$0xff] }
  0x18   : > { %3838 = vmatprep.subr.bf16.mxu0 %v4002_v11  ;;  %3984 = vmatpush3.bf16.msra.mxu1 %v4001_v7  ;;  %v306_v56 = vld [vmem:[%s4193_s12 + $0xd0] sm:$0xff]  ;;  %v307_v57 = vld [vmem:[%s4193_s12 + $0xd8] sm:$0xff]  ;;  %v308_v59 = vld [vmem:[%s4193_s12 + $0xe0] sm:$0xff]  ;;  %v317_v62 = vpack.c.bf16 %v291_v53, %v290_v52  ;;  %v318_v0 = vpack.c.bf16 %v293_v55, %v292_v54 }
  0x19   : > { %3977 = vmatprep.subr.bf16.mxu1 %v4002_v11  ;;  %v309_v60 = vld [vmem:[%s4193_s12 + $0xe8] sm:$0xff]  ;;  %v325_v1 = vpack.c.bf16 %v307_v57, %v306_v56  ;;  %v294_v4 = vld [vmem:[%s4193_s12 + $0x70] sm:$0xff]  ;;  %v295_v5 = vld [vmem:[%s4193_s12 + $0x78] sm:$0xff] }
  0x1a   : > { %v326_v3 = vpack.c.bf16 %v309_v60, %v308_v59  ;;  %v310_v6 = vld [vmem:[%s4193_s12 + $0xf0] sm:$0xff]  ;;  %v311_v7 = vld [vmem:[%s4193_s12 + $0xf8] sm:$0xff]  ;;  %v4022_v8 = vld [vmem:[%s5087_s3 + $0x28] sm:$0xff]   ;;  %v319_v9 = vpack.c.bf16 %v295_v5, %v294_v4 }
  0x1b   : > { %3839 = vmatpush3.bf16.msra.mxu0 %v4002_v11  ;;  %v327_v10 = vpack.c.bf16 %v311_v7, %v310_v6  ;;  %v4026_v14 = vld [vmem:[%s5087_s3 + $0x30] sm:$0xff]   ;;  %v4027_v15 = vld [vmem:[%s5087_s3 + $0xe0] sm:$0xff]   ;;  %v4028_v16 = vld [vmem:[%s5087_s3 + $0x78] sm:$0xff]  }
  0x1c   : > { %3840 = vmatprep.subr.bf16.mxu0 %v4003_v12  ;;  %3985 = vmatpush3.bf16.msra.mxu1 %v4002_v11  ;;  %v4126_v11 = vmov 0.0   ;;  %v4029_v17 = vld [vmem:[%s5087_s3 + $0xa0] sm:$0xff]   ;;  %v4030_v18 = vld [vmem:[%s5087_s3 + $0x38] sm:$0xff]   ;;  %v4039_v31 = vld [vmem:[%s5087_s3 + $0x148] sm:$0xff]  }
  0x1d   : > { %3978 = vmatprep.subr.bf16.mxu1 %v4003_v12  ;;  %592 = vst [vmem:[#allocation2] sm:$0xff] %v4126_v11  ;;  %593 = vst [vmem:[#allocation2 + $0x8] sm:$0xff] %v4126_v11  ;;  %v4038_v30 = vld [vmem:[%s5087_s3 + $0xb8] sm:$0xff]   ;;  %v4041_v33 = vld [vmem:[%s5087_s3 + $0x150] sm:$0xff]  }
  0x1e   : > { %594 = vst [vmem:[#allocation2 + $0x10] sm:$0x3] %v4126_v11  ;;  %596 = vst [vmem:[#allocation2 + $0x198] sm:$0xff] %v4126_v11  ;;  %v4042_v34 = vld [vmem:[%s5087_s3 + $0x110] sm:$0xff]   ;;  %v4043_v35 = vld [vmem:[%s5087_s3 + $0x158] sm:$0xff]  }
  0x1f   : > { %3841 = vmatpush3.bf16.msra.mxu0 %v4003_v12  ;;  %597 = vst [vmem:[#allocation2 + $0x1a0] sm:$0xff] %v4126_v11  ;;  %598 = vst [vmem:[#allocation2 + $0x1a8] sm:$0x3] %v4126_v11  ;;  %v4044_v36 = vld [vmem:[%s5087_s3 + $0x118] sm:$0xff]   ;;  %v4048_v39 = vld [vmem:[%s5087_s3 + $0x120] sm:$0xff]  }
  0x20   : > { %3842 = vmatprep.subr.bf16.mxu0 %v4004_v13  ;;  %3986 = vmatpush3.bf16.msra.mxu1 %v4003_v12  ;;  %600 = vst [vmem:[#allocation2 + $0x18] sm:$0x1] %v4126_v11  ;;  %601 = vst [vmem:[#allocation2 + $0x30] sm:$0x1] %v4126_v11  ;;  %v4024_v12 = vld [vmem:[%s5087_s3 + $0x70] sm:$0xff]   ;;  %v4051_v40 = vld [vmem:[%s5087_s3 + $0x168] sm:$0xff]  }
  0x21   : > { %3979 = vmatprep.subr.bf16.mxu1 %v4004_v13  ;;  %602 = vst [vmem:[#allocation2 + $0x48] sm:$0x1] %v4126_v11  ;;  %603 = vst [vmem:[#allocation2 + $0x60] sm:$0x1] %v4126_v11 }
  0x22   : > { %604 = vst [vmem:[#allocation2 + $0x78] sm:$0x1] %v4126_v11  ;;  %605 = vst [vmem:[#allocation2 + $0x90] sm:$0x1] %v4126_v11 }
  0x23   : > { %3843 = vmatpush3.bf16.msra.mxu0 %v4004_v13  ;;  %606 = vst [vmem:[#allocation2 + $0xa8] sm:$0x1] %v4126_v11  ;;  %607 = vst [vmem:[#allocation2 + $0xc0] sm:$0x1] %v4126_v11 }
  0x24   : > { %3987 = vmatpush3.bf16.msra.mxu1 %v4004_v13  ;;  %3444 = vmatprep.subr.bf16.mxu0 %v4011_v22  ;;  %608 = vst [vmem:[#allocation2 + $0xd8] sm:$0x1] %v4126_v11  ;;  %609 = vst [vmem:[#allocation2 + $0xf0] sm:$0x1] %v4126_v11  ;;  %v4025_v13 = vld [vmem:[%s5087_s3 + $0x98] sm:$0xff]   ;;  %v728_v19 = vld [vmem:[#allocation2 + $0x1] sm:$0xff] }
  0x25   : > { %3332 = vmatprep.subr.bf16.mxu1 %v4005_v23  ;;  %610 = vst [vmem:[#allocation2 + $0x108] sm:$0x1] %v4126_v11  ;;  %611 = vst [vmem:[#allocation2 + $0x120] sm:$0x1] %v4126_v11  ;;  %v729_v20 = vld [vmem:[#allocation2 + $0x9] sm:$0xff] }
  0x26   : > { %3845 = vmatmul.mubr.bf16.vlgmr.msra.gmra.mrb[0].mxu0 %v313_v24  ;;  %612 = vst [vmem:[#allocation2 + $0x138] sm:$0x1] %v4126_v11  ;;  %613 = vst [vmem:[#allocation2 + $0x150] sm:$0x1] %v4126_v11  ;;  %v760_v21 = vpack.c.bf16 %v729_v20, %v728_v19  ;;  %v4031_v22 = vld [vmem:[%s5087_s3 + $0xe8] sm:$0xff]   ;;  %v4127_v24 = vmov 0.0|0.0  }
  0x27   : > { %3848 = vmatprep.mubr.bf16.mxu0 %v314_v25  ;;  %3861 = vmatmul.mubr.bf16.vlgmr.msra.gmra.mrb[0].mxu1 %v321_v26  ;;  %614 = vst [vmem:[#allocation2 + $0x168] sm:$0x1] %v4126_v11  ;;  %615 = vst [vmem:[#allocation2 + $0x180] sm:$0x1] %v4126_v11  ;;  %v4032_v23 = vld [vmem:[%s5087_s3 + $0xa8] sm:$0xff]   ;;  %v4033_v25 = vld [vmem:[%s5087_s3 + $0x140] sm:$0xff]  }
  0x28   : > { %3864 = vmatprep.mubr.bf16.mxu1 %v322_v28  ;;  %3333 = vmatpush3.bf16.msra.mxu1 %v4006_v27  ;;  %616 = vst [vmem:[#allocation2 + $0x29] sm:$0x1] %v4126_v11  ;;  %617 = vst [vmem:[#allocation2 + $0x41] sm:$0x1] %v4126_v11  ;;  %v4034_v26 = vld [vmem:[%s5087_s3 + $0xf0] sm:$0xff]   ;;  %v4035_v27 = vld [vmem:[%s5087_s3 + $0x100] sm:$0xff]  }
  0x29   : > { %3334 = vmatprep.subr.bf16.mxu1 %v4007_v29  ;;  %3445 = vmatpush3.bf16.msra.mxu0 %v4013_v32  ;;  %618 = vst [vmem:[#allocation2 + $0x59] sm:$0x1] %v4126_v11  ;;  %619 = vst [vmem:[#allocation2 + $0x71] sm:$0x1] %v4126_v11  ;;  %v4036_v28 = vld [vmem:[%s5087_s3 + $0xb0] sm:$0xff]   ;;  %v4037_v29 = vld [vmem:[%s5087_s3 + $0xf8] sm:$0xff]  }
  0x2a   : > { %3446 = vmatprep.subr.bf16.mxu0 %v4015_v38  ;;  %620 = vst [vmem:[#allocation2 + $0x89] sm:$0x1] %v4126_v11  ;;  %621 = vst [vmem:[#allocation2 + $0xa1] sm:$0x1] %v4126_v11  ;;  %v4040_v32 = vld [vmem:[%s5087_s3 + $0x108] sm:$0xff]   ;;  %v4047_v38 = vld [vmem:[%s5087_s3 + $0x160] sm:$0xff]  }
  0x2b   : > { %622 = vst [vmem:[#allocation2 + $0xb9] sm:$0x1] %v4126_v11  ;;  %623 = vst [vmem:[#allocation2 + $0xd1] sm:$0x1] %v4126_v11 }
  0x2c   : > { %3335 = vmatpush3.bf16.msra.mxu1 %v4008_v37  ;;  %624 = vst [vmem:[#allocation2 + $0xe9] sm:$0x1] %v4126_v11  ;;  %625 = vst [vmem:[#allocation2 + $0x101] sm:$0x1] %v4126_v11  ;;  %v4045_v37 = vld [vmem:[%s5087_s3 + $0x1c0] sm:$0xff]  }
  0x2d   : > { %3336 = vmatprep.subr.bf16.mxu1 %v4009_v41  ;;  %3447 = vmatpush3.bf16.msra.mxu0 %v4017_v42  ;;  %626 = vst [vmem:[#allocation2 + $0x119] sm:$0x1] %v4126_v11  ;;  %627 = vst [vmem:[#allocation2 + $0x131] sm:$0x1] %v4126_v11  ;;  %v4052_v41 = vld [vmem:[%s5087_s3 + $0x128] sm:$0xff]   ;;  %v4055_v42 = vld [vmem:[%s5087_s3 + $0x170] sm:$0xff]  }
  0x2e   : > { %3849 = vmatmul.mubr.bf16.gmra.mrb[4].mxu0 %v315_v44  ;;  %3448 = vmatprep.subr.bf16.mxu0 %v4019_v43  ;;  %628 = vst [vmem:[#allocation2 + $0x149] sm:$0x1] %v4126_v11  ;;  %629 = vst [vmem:[#allocation2 + $0x161] sm:$0x1] %v4126_v11  ;;  %v4056_v43 = vld [vmem:[%s5087_s3 + $0x130] sm:$0xff]   ;;  %v4059_v44 = vld [vmem:[%s5087_s3 + $0x178] sm:$0xff]  }
  0x2f   : > { %3852 = vmatprep.mubr.bf16.mxu0 %v316_v46  ;;  %3865 = vmatmul.mubr.bf16.gmra.mrb[4].mxu1 %v323_v47  ;;  %630 = vst [vmem:[#allocation2 + $0x179] sm:$0x1] %v4126_v11  ;;  %631 = vst [vmem:[#allocation2 + $0x191] sm:$0x1] %v4126_v11  ;;  %v4392_v46 = vld [vmem:[%s5086_s2] ss:$0 sm:$0xff] }
  0x30   : > { %3868 = vmatprep.mubr.bf16.mxu1 %v324_v50  ;;  %3337 = vmatpush3.bf16.msra.mxu1 %v4010_v45  ;;  %v4060_v45 = vld [vmem:[%s5087_s3 + $0x138] sm:$0xff]  }
  0x31   : > { %3338 = vmatprep.subr.bf16.mxu1 %v4012_v48  ;;  %3449 = vmatpush3.bf16.msra.mxu0 %v4021_v49 }
  0x32   : > { %3450 = vmatprep.subr.bf16.mxu0 %v4023_v51 }
  0x34   : > { %3339 = vmatpush3.bf16.msra.mxu1 %v4014_v58 }
  0x35   : > { %3340 = vmatprep.subr.bf16.mxu1 %v4016_v61  ;;  %3451 = vmatpush3.bf16.msra.mxu0 %v4025_v13 }
  0x36   : > { %3853 = vmatmul.mubr.bf16.gmra.mrb[8].mxu0 %v317_v62  ;;  %3452 = vmatprep.subr.bf16.mxu0 %v4027_v15 }
  0x37   : > { %3856 = vmatprep.mubr.bf16.mxu0 %v318_v0  ;;  %3869 = vmatmul.mubr.bf16.gmra.mrb[8].mxu1 %v325_v1  ;;  %v4404_v1 = vld [vmem:[%s5087_s3 + $0x200] sm:$0xff]  }
  0x38   : > { %3872 = vmatprep.mubr.bf16.mxu1 %v326_v3  ;;  %3341 = vmatpush3.bf16.msra.mxu1 %v4018_v63 }
  0x39   : > { %3342 = vmatprep.subr.bf16.mxu1 %v4020_v2  ;;  %3453 = vmatpush3.bf16.msra.mxu0 %v4029_v17 }
  0x3a   : > { %3454 = vmatprep.subr.bf16.mxu0 %v4031_v22 }
  0x3c   : > { %3343 = vmatpush3.bf16.msra.mxu1 %v4022_v8 }
  0x3d   : > { %3344 = vmatprep.subr.bf16.mxu1 %v4024_v12  ;;  %3455 = vmatpush3.bf16.msra.mxu0 %v4032_v23 }
  0x3e   : > { %3857 = vmatmul.mubr.bf16.gmra.mrb[12].mxu0 %v319_v9  ;;  %3456 = vmatprep.subr.bf16.mxu0 %v4034_v26 }
  0x3f   : > { %3873 = vmatmul.mubr.bf16.gmra.mrb[12].mxu1 %v327_v10 }
  0x40   : > { %3345 = vmatpush3.bf16.msra.mxu1 %v4026_v14  ;;  %2000 = vmatprep.mubr.bf16.mxu1 %v760_v21 }
  0x41   : > { %3346 = vmatprep.subr.bf16.mxu1 %v4028_v16  ;;  %3457 = vmatpush3.bf16.msra.mxu0 %v4036_v28  ;;  %v793_v28 = vld [vmem:[#allocation2 + $0xa] sm:$0xff] }
  0x42   : > { %3458 = vmatprep.subr.bf16.mxu0 %v4037_v29 }
  0x44   : > { %3347 = vmatpush3.bf16.msra.mxu1 %v4030_v18 }
  0x45   : > { %3556 = vmatprep.subr.bf16.mxu1 %v4033_v25  ;;  %3459 = vmatpush3.bf16.msra.mxu0 %v4038_v30 }
  0x46   : > { %3668 = vmatprep.subr.bf16.mxu0 %v4045_v37 }
  0x47   : > { %2001 = vmatmul.mubr.bf16.vlgmr.msra.gmra.mrb[16].mxu1 %v4127_v24 }
  0x48   : > { %3557 = vmatpush3.bf16.msra.mxu1 %v4035_v27  ;;  %v792_v27 = vld [vmem:[#allocation2 + $0x2] sm:$0xff] }
  0x49   : > { %3558 = vmatprep.subr.bf16.mxu1 %v4039_v31 }
  0x4c   : > { %3559 = vmatpush3.bf16.msra.mxu1 %v4040_v32 }
  0x4d   : > { %3560 = vmatprep.subr.bf16.mxu1 %v4041_v33 }
  0x50   : > { %3561 = vmatpush3.bf16.msra.mxu1 %v4042_v34 }
  0x51   : > { %3562 = vmatprep.subr.bf16.mxu1 %v4043_v35 }
  0x54   : > { %3563 = vmatpush3.bf16.msra.mxu1 %v4044_v36 }
  0x55   : > { %3564 = vmatprep.subr.bf16.mxu1 %v4047_v38 }
  0x58   : > { %3565 = vmatpush3.bf16.msra.mxu1 %v4048_v39  ;;  %v824_v39 = vpack.c.bf16 %v793_v28, %v792_v27 }
  0x59   : > { %3566 = vmatprep.subr.bf16.mxu1 %v4051_v40 }
  0x5c   : > { %3567 = vmatpush3.bf16.msra.mxu1 %v4052_v41 }
  0x5d   : > { %3568 = vmatprep.subr.bf16.mxu1 %v4055_v42 }
  0x60   : > { %3569 = vmatpush3.bf16.msra.mxu1 %v4056_v43 }
  0x61   : > { %3570 = vmatprep.subr.bf16.mxu1 %v4059_v44 }
  0x64   : > { %3571 = vmatpush3.bf16.msra.mxu1 %v4060_v45 }
  0x65   : > { %3876 = vmatprep.subr.bf16.mxu1 %v4404_v1 }
  0xf9   : > { %v3846_v47 = vpop.f32.mrb[0].mxu0 }
  0xfa   : > { %v442_v48 = vadd.f32 %v3846_v47, %v4392_v46  ;;  %v433_v49 = vpop.f32.mrb[1].mxu0  ;;  %v3862_v50 = vpop.f32.mrb[0].mxu1  ;;  %v4046_v47 = vld [vmem:[%s5087_s3 + $0x180] sm:$0xff]  }
  0xfb   : > { %v434_v51 = vadd.f32 %v4392_v46, %v433_v49  ;;  %v3847_v52 = vpop.f32.mrb[2].mxu0  ;;  %v506_v53 = vadd.f32 %v3862_v50, %v4392_v46  ;;  %v497_v54 = vpop.f32.mrb[1].mxu1 }
  0xfc   : > { %v562_v55 = vmax.f32 %v442_v48, 0.0  ;;  %v445_v56 = vadd.f32 %v3847_v52, %v4392_v46  ;;  %v436_v57 = vpop.f32.mrb[3].mxu0  ;;  %v498_v58 = vadd.f32 %v4392_v46, %v497_v54  ;;  %v3863_v59 = vpop.f32.mrb[2].mxu1  ;;  %v4049_v52 = vld [vmem:[%s5087_s3 + $0x1c8] sm:$0xff]  }
  0xfd   : > { %v560_v60 = vmax.f32 %v434_v51, 0.0  ;;  %v437_v61 = vadd.f32 %v4392_v46, %v436_v57  ;;  %v578_v62 = vmax.f32 %v506_v53, 0.0  ;;  %v509_v63 = vadd.f32 %v3863_v59, %v4392_v46  ;;  %v500_v0 = vpop.f32.mrb[3].mxu1 }
  0xfe   : > { %634 = vst [vmem:[#allocation2 + $0x31] sm:$0xff] %v562_v55  ;;  %v563_v2 = vmax.f32 %v445_v56, 0.0  ;;  %v576_v3 = vmax.f32 %v498_v58, 0.0  ;;  %v501_v4 = vadd.f32 %v4392_v46, %v500_v0 }
  0xff   : > { %632 = vst [vmem:[#allocation2 + $0x19] sm:$0xff] %v560_v60  ;;  %v561_v5 = vmax.f32 %v437_v61, 0.0  ;;  %650 = vst [vmem:[#allocation2 + $0xf1] sm:$0xff] %v578_v62  ;;  %v579_v6 = vmax.f32 %v509_v63, 0.0 }
 0x100   : > { %635 = vst [vmem:[#allocation2 + $0x39] sm:$0xff] %v563_v2  ;;  %v4408_v7 = vpack.c.bf16 %v563_v2, %v562_v55  ;;  %648 = vst [vmem:[#allocation2 + $0xd9] sm:$0xff] %v576_v3  ;;  %v577_v8 = vmax.f32 %v501_v4, 0.0  ;;  %v4050_v4 = vld [vmem:[%s5087_s3 + $0x188] sm:$0xff]  }
 0x101   : > { %633 = vst [vmem:[#allocation2 + $0x21] sm:$0xff] %v561_v5  ;;  %v3850_v9 = vpop.f32.mrb[4].mxu0  ;;  %v761_v10 = vpack.c.bf16 %v561_v5, %v560_v60  ;;  %651 = vst [vmem:[#allocation2 + $0xf9] sm:$0xff] %v579_v6  ;;  %v4410_v11 = vpack.c.bf16 %v579_v6, %v578_v62 }
 0x102   : > { %v458_v12 = vadd.f32 %v3850_v9, %v4392_v46  ;;  %v449_v13 = vpop.f32.mrb[5].mxu0  ;;  %649 = vst [vmem:[#allocation2 + $0xe1] sm:$0xff] %v577_v8  ;;  %v3866_v14 = vpop.f32.mrb[4].mxu1  ;;  %v4413_v15 = vpack.c.bf16 %v577_v8, %v576_v3 }
 0x103   : > { %v450_v16 = vadd.f32 %v4392_v46, %v449_v13  ;;  %v3851_v17 = vpop.f32.mrb[6].mxu0  ;;  %2008 = vmatprep.mubr.bf16.mxu1 %v761_v10  ;;  %v522_v18 = vadd.f32 %v3866_v14, %v4392_v46  ;;  %v513_v19 = vpop.f32.mrb[5].mxu1  ;;  %v4053_v13 = vld [vmem:[%s5087_s3 + $0x1d0] sm:$0xff]  }
 0x104   : > { %v566_v20 = vmax.f32 %v458_v12, 0.0  ;;  %v461_v21 = vadd.f32 %v3851_v17, %v4392_v46  ;;  %v452_v22 = vpop.f32.mrb[7].mxu0  ;;  %v514_v23 = vadd.f32 %v4392_v46, %v513_v19  ;;  %v3867_v24 = vpop.f32.mrb[6].mxu1 }
 0x105   : > { %v564_v25 = vmax.f32 %v450_v16, 0.0  ;;  %v453_v26 = vadd.f32 %v4392_v46, %v452_v22  ;;  %v582_v29 = vmax.f32 %v522_v18, 0.0  ;;  %v525_v30 = vadd.f32 %v3867_v24, %v4392_v46  ;;  %v516_v31 = vpop.f32.mrb[7].mxu1  ;;  %v858_v49 = vld [vmem:[#allocation2 + $0x30] sm:$0xff] }
 0x106   : > { %638 = vst [vmem:[#allocation2 + $0x61] sm:$0xff] %v566_v20  ;;  %v567_v32 = vmax.f32 %v461_v21, 0.0  ;;  %v580_v33 = vmax.f32 %v514_v23, 0.0  ;;  %v517_v34 = vadd.f32 %v4392_v46, %v516_v31  ;;  %v856_v37 = vld [vmem:[#allocation2 + $0x18] sm:$0xff] }
 0x107   : > { %636 = vst [vmem:[#allocation2 + $0x49] sm:$0xff] %v564_v25  ;;  %v4422_v35 = vmax.f32 %v453_v26, 0.0  ;;  %654 = vst [vmem:[#allocation2 + $0x121] sm:$0xff] %v582_v29  ;;  %v583_v36 = vmax.f32 %v525_v30, 0.0  ;;  %v859_v40 = vld [vmem:[#allocation2 + $0x38] sm:$0xff] }
 0x108   : > { %639 = vst [vmem:[#allocation2 + $0x69] sm:$0xff] %v567_v32  ;;  %v857_v38 = vld [vmem:[#allocation2 + $0x20] sm:$0xff]  ;;  %v4424_v41 = vpack.c.bf16 %v567_v32, %v566_v20  ;;  %652 = vst [vmem:[#allocation2 + $0x109] sm:$0xff] %v580_v33  ;;  %v581_v42 = vmax.f32 %v517_v34, 0.0  ;;  %v4441_v55 = vpack.c.bf16 %v859_v40, %v858_v49  ;;  %v4057_v32 = vld [vmem:[%s5087_s3 + $0x1d8] sm:$0xff]  }
 0x109   : > { %637 = vst [vmem:[#allocation2 + $0x51] sm:$0xff] %v4422_v35  ;;  %v888_v43 = vpack.c.bf16 %v857_v38, %v856_v37  ;;  %v3854_v44 = vpop.f32.mrb[8].mxu0  ;;  %v4428_v45 = vpack.c.bf16 %v4422_v35, %v564_v25  ;;  %655 = vst [vmem:[#allocation2 + $0x129] sm:$0xff] %v583_v36  ;;  %v4433_v48 = vpack.c.bf16 %v583_v36, %v582_v29  ;;  %v794_v14 = vld [vmem:[#allocation2 + $0x1a] sm:$0xff]  ;;  %v795_v16 = vld [vmem:[#allocation2 + $0x22] sm:$0xff] }
 0x10a   : > { %v474_v50 = vadd.f32 %v3854_v44, %v4392_v46  ;;  %v465_v51 = vpop.f32.mrb[9].mxu0  ;;  %653 = vst [vmem:[#allocation2 + $0x111] sm:$0xff] %v581_v42  ;;  %v3870_v53 = vpop.f32.mrb[8].mxu1  ;;  %v4439_v54 = vpack.c.bf16 %v581_v42, %v580_v33  ;;  %v4054_v25 = vld [vmem:[%s5087_s3 + $0x190] sm:$0xff]   ;;  %v4473_v27 = vpack.c.bf16 %v795_v16, %v794_v14 }
 0x10b   : > { %2161 = vmatprep.mubr.bf16.mxu0 %v888_v43  ;;  %2009 = vmatmul.mubr.bf16.gmra.mrb[20].mxu1 %v888_v43  ;;  %v466_v56 = vadd.f32 %v4392_v46, %v465_v51  ;;  %v3855_v57 = vpop.f32.mrb[10].mxu0  ;;  %v538_v58 = vadd.f32 %v3870_v53, %v4392_v46  ;;  %v529_v59 = vpop.f32.mrb[9].mxu1  ;;  %v4066_v14 = vld [vmem:[%s5087_s3 + $0x1f0] sm:$0xff]  }
 0x10c   : > { %2162 = vmatmul.mubr.bf16.vlgmr.msra.gmra.mrb[16].mxu0 %v824_v39  ;;  %2016 = vmatprep.mubr.bf16.mxu1 %v4408_v7  ;;  %v570_v60 = vmax.f32 %v474_v50, 0.0  ;;  %v477_v61 = vadd.f32 %v3855_v57, %v4392_v46  ;;  %v468_v62 = vpop.f32.mrb[11].mxu0  ;;  %v530_v63 = vadd.f32 %v4392_v46, %v529_v59  ;;  %v3871_v0 = vpop.f32.mrb[10].mxu1  ;;  %v4061_v57 = vld [vmem:[%s5087_s3 + $0x1e0] sm:$0xff]  }
 0x10d   : > { %2169 = vmatprep.mubr.bf16.mxu0 %v4441_v55  ;;  %v568_v2 = vmax.f32 %v466_v56, 0.0  ;;  %v469_v3 = vadd.f32 %v4392_v46, %v468_v62  ;;  %3669 = vmatpush3.bf16.msra.mxu0 %v4046_v47  ;;  %v586_v5 = vmax.f32 %v538_v58, 0.0  ;;  %v541_v6 = vadd.f32 %v3871_v0, %v4392_v46  ;;  %v532_v7 = vpop.f32.mrb[11].mxu1  ;;  %v796_v58 = vld [vmem:[#allocation2 + $0x32] sm:$0xff]  ;;  %v797_v59 = vld [vmem:[#allocation2 + $0x3a] sm:$0xff] }
 0x10e   : > { %642 = vst [vmem:[#allocation2 + $0x91] sm:$0xff] %v570_v60  ;;  %v4454_v8 = vmax.f32 %v477_v61, 0.0  ;;  %v860_v9 = vld [vmem:[#allocation2 + $0x48] sm:$0xff]  ;;  %3670 = vmatprep.subr.bf16.mxu0 %v4049_v52  ;;  %v584_v10 = vmax.f32 %v530_v63, 0.0  ;;  %v533_v12 = vadd.f32 %v4392_v46, %v532_v7  ;;  %v862_v62 = vld [vmem:[#allocation2 + $0x60] sm:$0xff] }
 0x10f   : > { %640 = vst [vmem:[#allocation2 + $0x79] sm:$0xff] %v568_v2  ;;  %v569_v17 = vmax.f32 %v469_v3, 0.0  ;;  %658 = vst [vmem:[#allocation2 + $0x151] sm:$0xff] %v586_v5  ;;  %v587_v18 = vmax.f32 %v541_v6, 0.0  ;;  %v863_v63 = vld [vmem:[#allocation2 + $0x68] sm:$0xff]  ;;  %v4062_v3 = vld [vmem:[%s5087_s3 + $0x1a0] sm:$0xff]  }
 0x110   : > { %643 = vst [vmem:[#allocation2 + $0x99] sm:$0xff] %v4454_v8  ;;  %v861_v19 = vld [vmem:[#allocation2 + $0x50] sm:$0xff]  ;;  %v4462_v20 = vpack.c.bf16 %v4454_v8, %v570_v60  ;;  %656 = vst [vmem:[#allocation2 + $0x139] sm:$0xff] %v584_v10  ;;  %v585_v21 = vmax.f32 %v533_v12, 0.0  ;;  %v4063_v7 = vld [vmem:[%s5087_s3 + $0x1e8] sm:$0xff]  }
 0x111   : > { %v4464_v22 = vpack.c.bf16 %v861_v19, %v860_v9  ;;  %641 = vst [vmem:[#allocation2 + $0x81] sm:$0xff] %v569_v17  ;;  %v3858_v23 = vpop.f32.mrb[12].mxu0  ;;  %v4466_v24 = vpack.c.bf16 %v569_v17, %v568_v2  ;;  %3671 = vmatpush3.bf16.msra.mxu0 %v4050_v4  ;;  %659 = vst [vmem:[#allocation2 + $0x159] sm:$0xff] %v587_v18  ;;  %v4471_v26 = vpack.c.bf16 %v587_v18, %v586_v5  ;;  %v798_v16 = vld [vmem:[#allocation2 + $0x4a] sm:$0xff]  ;;  %v799_v17 = vld [vmem:[#allocation2 + $0x52] sm:$0xff] }
 0x112   : > { %v490_v28 = vadd.f32 %v3858_v23, %v4392_v46  ;;  %v481_v29 = vpop.f32.mrb[13].mxu0  ;;  %657 = vst [vmem:[#allocation2 + $0x141] sm:$0xff] %v585_v21  ;;  %3672 = vmatprep.subr.bf16.mxu0 %v4053_v13  ;;  %v3874_v30 = vpop.f32.mrb[12].mxu1  ;;  %v4476_v31 = vpack.c.bf16 %v585_v21, %v584_v10  ;;  %v4507_v5 = vpack.c.bf16 %v797_v59, %v796_v58  ;;  %v4064_v10 = vld [vmem:[%s5087_s3 + $0x1a8] sm:$0xff]   ;;  %v4068_v21 = vld [vmem:[%s5087_s3 + $0x1f8] sm:$0xff]  }
 0x113   : > { %2017 = vmatmul.mubr.bf16.gmra.mrb[24].mxu1 %v4441_v55  ;;  %v482_v33 = vadd.f32 %v4392_v46, %v481_v29  ;;  %v3859_v34 = vpop.f32.mrb[14].mxu0  ;;  %v554_v36 = vadd.f32 %v3874_v30, %v4392_v46  ;;  %v545_v37 = vpop.f32.mrb[13].mxu1  ;;  %v4515_v9 = vpack.c.bf16 %v863_v63, %v862_v62  ;;  %v4531_v19 = vpack.c.bf16 %v799_v17, %v798_v16  ;;  %v4069_v23 = vld [vmem:[%s5087_s3 + $0x1b8] sm:$0xff]  }
 0x114   : > { %2170 = vmatmul.mubr.bf16.gmra.mrb[20].mxu0 %v4473_v27  ;;  %2024 = vmatprep.mubr.bf16.mxu1 %v4428_v45  ;;  %v574_v38 = vmax.f32 %v490_v28, 0.0  ;;  %v493_v39 = vadd.f32 %v3859_v34, %v4392_v46  ;;  %v484_v40 = vpop.f32.mrb[15].mxu0  ;;  %v546_v42 = vadd.f32 %v4392_v46, %v545_v37  ;;  %v3875_v43 = vpop.f32.mrb[14].mxu1  ;;  %v4058_v45 = vld [vmem:[%s5087_s3 + $0x198] sm:$0xff]   ;;  %v801_v28 = vld [vmem:[#allocation2 + $0x6a] sm:$0xff] }
 0x115   : > { %2177 = vmatprep.mubr.bf16.mxu0 %v4464_v22  ;;  %v572_v44 = vmax.f32 %v482_v33, 0.0  ;;  %v485_v47 = vadd.f32 %v4392_v46, %v484_v40  ;;  %3673 = vmatpush3.bf16.msra.mxu0 %v4054_v25  ;;  %v590_v49 = vmax.f32 %v554_v36, 0.0  ;;  %v557_v50 = vadd.f32 %v3875_v43, %v4392_v46  ;;  %v548_v51 = vpop.f32.mrb[15].mxu1  ;;  %v800_v25 = vld [vmem:[#allocation2 + $0x62] sm:$0xff]  ;;  %v866_v29 = vld [vmem:[#allocation2 + $0x90] sm:$0xff] }
 0x116   : > { %646 = vst [vmem:[#allocation2 + $0xc1] sm:$0xff] %v574_v38  ;;  %v575_v52 = vmax.f32 %v493_v39, 0.0  ;;  %v588_v53 = vmax.f32 %v546_v42, 0.0  ;;  %v549_v56 = vadd.f32 %v4392_v46, %v548_v51  ;;  %3674 = vmatprep.subr.bf16.mxu0 %v4057_v32  ;;  %v864_v12 = vld [vmem:[#allocation2 + $0x78] sm:$0xff]  ;;  %v4543_v32 = vpack.c.bf16 %v801_v28, %v800_v25 }
 0x117   : > { %644 = vst [vmem:[#allocation2 + $0xa9] sm:$0xff] %v572_v44  ;;  %v573_v60 = vmax.f32 %v485_v47, 0.0  ;;  %662 = vst [vmem:[#allocation2 + $0x181] sm:$0xff] %v590_v49  ;;  %v591_v61 = vmax.f32 %v557_v50, 0.0  ;;  %v867_v30 = vld [vmem:[#allocation2 + $0x98] sm:$0xff] }
 0x118   : > { %647 = vst [vmem:[#allocation2 + $0xc9] sm:$0xff] %v575_v52  ;;  %v4498_v0 = vpack.c.bf16 %v575_v52, %v574_v38  ;;  %660 = vst [vmem:[#allocation2 + $0x169] sm:$0xff] %v588_v53  ;;  %v589_v2 = vmax.f32 %v549_v56, 0.0  ;;  %v865_v13 = vld [vmem:[#allocation2 + $0x80] sm:$0xff]  ;;  %v4546_v33 = vpack.c.bf16 %v867_v30, %v866_v29  ;;  %v804_v42 = vld [vmem:[#allocation2 + $0x92] sm:$0xff] }
 0x119   : > { %645 = vst [vmem:[#allocation2 + $0xb1] sm:$0xff] %v573_v60  ;;  %v4500_v46 = vpack.c.bf16 %v573_v60, %v572_v44  ;;  %663 = vst [vmem:[#allocation2 + $0x189] sm:$0xff] %v591_v61  ;;  %3675 = vmatpush3.bf16.msra.mxu0 %v4058_v45  ;;  %v4505_v4 = vpack.c.bf16 %v591_v61, %v590_v49  ;;  %v4526_v18 = vpack.c.bf16 %v865_v13, %v864_v12  ;;  %v802_v37 = vld [vmem:[#allocation2 + $0x7a] sm:$0xff]  ;;  %v803_v38 = vld [vmem:[#allocation2 + $0x82] sm:$0xff] }
 0x11a   : > { %661 = vst [vmem:[#allocation2 + $0x171] sm:$0xff] %v589_v2  ;;  %v4509_v6 = vpack.c.bf16 %v589_v2, %v588_v53  ;;  %3676 = vmatprep.subr.bf16.mxu0 %v4061_v57  ;;  %v4553_v40 = vpack.c.bf16 %v803_v38, %v802_v37  ;;  %v805_v43 = vld [vmem:[#allocation2 + $0x9a] sm:$0xff]  ;;  %v874_v60 = vld [vmem:[#allocation2 + $0xf0] sm:$0xff]  ;;  %v876_v2 = vld [vmem:[#allocation2 + $0x108] sm:$0xff] }
 0x11b   : > { %2025 = vmatmul.mubr.bf16.gmra.mrb[28].mxu1 %v4464_v22  ;;  %v4559_v49 = vpack.c.bf16 %v805_v43, %v804_v42  ;;  %v872_v51 = vld [vmem:[#allocation2 + $0xd8] sm:$0xff]  ;;  %v873_v45 = vld [vmem:[#allocation2 + $0xe0] sm:$0xff]  ;;  %v879_v30 = vld [vmem:[#allocation2 + $0x128] sm:$0xff] }
 0x11c   : > { %2178 = vmatmul.mubr.bf16.gmra.mrb[24].mxu0 %v4507_v5  ;;  %2032 = vmatprep.mubr.bf16.mxu1 %v4424_v41  ;;  %v4067_v41 = vld [vmem:[%s5087_s3 + $0x1b0] sm:$0xff]   ;;  %v4567_v56 = vpack.c.bf16 %v873_v45, %v872_v51  ;;  %v875_v61 = vld [vmem:[#allocation2 + $0xf8] sm:$0xff]  ;;  %v878_v29 = vld [vmem:[#allocation2 + $0x120] sm:$0xff] }
 0x11d   : > { %2185 = vmatprep.mubr.bf16.mxu0 %v4515_v9  ;;  %3677 = vmatpush3.bf16.msra.mxu0 %v4062_v3  ;;  %v870_v44 = vld [vmem:[#allocation2 + $0xc0] sm:$0xff]  ;;  %v4578_v63 = vpack.c.bf16 %v875_v61, %v874_v60  ;;  %v877_v3 = vld [vmem:[#allocation2 + $0x110] sm:$0xff]  ;;  %v880_v37 = vld [vmem:[#allocation2 + $0x138] sm:$0xff] }
 0x11e   : > { %3678 = vmatprep.subr.bf16.mxu0 %v4063_v7  ;;  %v868_v34 = vld [vmem:[#allocation2 + $0xa8] sm:$0xff]  ;;  %v810_v7 = vld [vmem:[#allocation2 + $0xda] sm:$0xff]  ;;  %v4583_v12 = vpack.c.bf16 %v877_v3, %v876_v2  ;;  %v815_v43 = vld [vmem:[#allocation2 + $0x112] sm:$0xff] }
 0x11f   : > { %v871_v47 = vld [vmem:[#allocation2 + $0xc8] sm:$0xff]  ;;  %v813_v25 = vld [vmem:[#allocation2 + $0xfa] sm:$0xff] }
 0x120   : > { %v869_v36 = vld [vmem:[#allocation2 + $0xb0] sm:$0xff]  ;;  %v4562_v50 = vpack.c.bf16 %v871_v47, %v870_v44  ;;  %v808_v58 = vld [vmem:[#allocation2 + $0xc2] sm:$0xff]  ;;  %v818_v2 = vld [vmem:[#allocation2 + $0x13a] sm:$0xff] }
 0x121   : > { %3679 = vmatpush3.bf16.msra.mxu0 %v4064_v10  ;;  %v4551_v39 = vpack.c.bf16 %v869_v36, %v868_v34  ;;  %v806_v52 = vld [vmem:[#allocation2 + $0xaa] sm:$0xff]  ;;  %v807_v53 = vld [vmem:[#allocation2 + $0xb2] sm:$0xff]  ;;  %v811_v10 = vld [vmem:[#allocation2 + $0xe2] sm:$0xff]  ;;  %v4598_v36 = vpack.c.bf16 %v879_v30, %v878_v29 }
 0x122   : > { %3680 = vmatprep.subr.bf16.mxu0 %v4066_v14  ;;  %v4569_v57 = vpack.c.bf16 %v807_v53, %v806_v52  ;;  %v809_v59 = vld [vmem:[#allocation2 + $0xca] sm:$0xff]  ;;  %v4585_v13 = vpack.c.bf16 %v811_v10, %v810_v7  ;;  %v3348_v14 = vpop.f32.mrb[16].mxu1  ;;  %v881_v38 = vld [vmem:[#allocation2 + $0x140] sm:$0xff]  ;;  %v883_v53 = vld [vmem:[#allocation2 + $0x158] sm:$0xff] }
 0x123   : > { %2033 = vmatmul.mubr.bf16.gmra.mrb[32].mxu1 %v4515_v9  ;;  %v4575_v62 = vpack.c.bf16 %v809_v59, %v808_v58  ;;  %v3349_v16 = vpop.f32.mrb[17].mxu1  ;;  %v814_v42 = vld [vmem:[#allocation2 + $0x10a] sm:$0xff]  ;;  %v4603_v44 = vpack.c.bf16 %v881_v38, %v880_v37  ;;  %v816_v51 = vld [vmem:[#allocation2 + $0x122] sm:$0xff]  ;;  %v823_v37 = vld [vmem:[#allocation2 + $0x172] sm:$0xff] }
 0x124   : > { %2186 = vmatmul.mubr.bf16.gmra.mrb[28].mxu0 %v4531_v19  ;;  %2040 = vmatprep.mubr.bf16.mxu1 %v4466_v24  ;;  %v4591_v17 = vadd.f32 %v3349_v16, %v3348_v14  ;;  %v4605_v47 = vpack.c.bf16 %v815_v43, %v814_v42  ;;  %v817_v45 = vld [vmem:[#allocation2 + $0x12a] sm:$0xff]  ;;  %v819_v3 = vld [vmem:[#allocation2 + $0x142] sm:$0xff]  ;;  %v820_v14 = vld [vmem:[#allocation2 + $0x152] sm:$0xff] }
 0x125   : > { %2193 = vmatprep.mubr.bf16.mxu0 %v4526_v18  ;;  %3681 = vmatpush3.bf16.msra.mxu0 %v4067_v41  ;;  %v3351_v41 = vpop.f32.mrb[18].mxu1  ;;  %v882_v52 = vld [vmem:[#allocation2 + $0x150] sm:$0xff]  ;;  %v4611_v58 = vpack.c.bf16 %v817_v45, %v816_v51  ;;  %v884_v60 = vld [vmem:[#allocation2 + $0x168] sm:$0xff]  ;;  %v4621_v10 = vpack.c.bf16 %v819_v3, %v818_v2  ;;  %v821_v16 = vld [vmem:[#allocation2 + $0x15a] sm:$0xff] }
 0x126   : > { %3682 = vmatprep.subr.bf16.mxu0 %v4068_v21  ;;  %v3352_v21 = vpop.f32.mrb[19].mxu1  ;;  %v4614_v59 = vpack.c.bf16 %v883_v53, %v882_v52  ;;  %v885_v61 = vld [vmem:[#allocation2 + $0x170] sm:$0xff]  ;;  %v921_v29 = vld [vmem:[#allocation2 + $0x21] sm:$0xff]  ;;  %v920_v38 = vld [vmem:[#allocation2 + $0x19] sm:$0xff] }
 0x127   : > { %v4593_v28 = vadd.f32 %v3352_v21, %v3351_v41  ;;  %v4619_v7 = vpack.c.bf16 %v885_v61, %v884_v60  ;;  %v886_v41 = vld [vmem:[#allocation2 + $0x180] sm:$0xff]  ;;  %v887_v21 = vld [vmem:[#allocation2 + $0x188] sm:$0xff]  ;;  %v952_v43 = vpack.c.bf16 %v921_v29, %v920_v38  ;;  %v1113_v45 = vld [vmem:[#allocation2 + $0x31] sm:$0xff] }
 0x128   : > { %v822_v30 = vld [vmem:[#allocation2 + $0x16a] sm:$0xff]  ;;  %v1114_v42 = vld [vmem:[#allocation2 + $0x39] sm:$0xff] }
 0x129   : > { %3683 = vmatpush3.bf16.msra.mxu0 %v4069_v23  ;;  %v812_v23 = vld [vmem:[#allocation2 + $0xf2] sm:$0xff]  ;;  %v4635_v51 = vpack.c.bf16 %v823_v37, %v822_v30  ;;  %v4070_v52 = vld [vmem:[%s5087_s3 + $0x208] sm:$0xff]   ;;  %v1145_v53 = vpack.c.bf16 %v1114_v42, %v1113_v45 }
 0x12a   : > { %v4595_v34 = vpack.c.bf16 %v813_v25, %v812_v23  ;;  %v4627_v23 = vpack.c.bf16 %v821_v16, %v820_v14  ;;  %v4630_v25 = vpack.c.bf16 %v887_v21, %v886_v41  ;;  %v1115_v60 = vld [vmem:[#allocation2 + $0x49] sm:$0xff]  ;;  %v4072_v61 = vld [vmem:[%s5087_s3 + $0x218] sm:$0xff]  }
 0x12b   : > { %2041 = vmatmul.mubr.bf16.gmra.mrb[36].mxu1 %v4526_v18  ;;  %v1146_v2 = vpack.c.bf16 %v4422_v35, %v1115_v60  ;;  %v1118_v3 = vld [vmem:[#allocation2 + $0x69] sm:$0xff] }
 0x12c   : > { %2194 = vmatmul.mubr.bf16.gmra.mrb[32].mxu0 %v4543_v32  ;;  %2048 = vmatprep.mubr.bf16.mxu1 %v4462_v20  ;;  %v4074_v14 = vld [vmem:[%s5087_s3 + $0x228] sm:$0xff]  }
 0x12d   : > { %2201 = vmatprep.mubr.bf16.mxu0 %v4546_v33  ;;  %v1014_v37 = vld [vmem:[#allocation2 + $0x182] sm:$0xff]  ;;  %v1015_v38 = vld [vmem:[#allocation2 + $0x18a] sm:$0xff] }
 0x133   : > { %2049 = vmatmul.mubr.bf16.gmra.mrb[40].mxu1 %v4546_v33 }
 0x134   : > { %2202 = vmatmul.mubr.bf16.gmra.mrb[36].mxu0 %v4553_v40  ;;  %2056 = vmatprep.mubr.bf16.mxu1 %v4500_v46 }
 0x135   : > { %2209 = vmatprep.mubr.bf16.mxu0 %v4551_v39 }
 0x13b   : > { %2057 = vmatmul.mubr.bf16.gmra.mrb[44].mxu1 %v4551_v39 }
 0x13c   : > { %2210 = vmatmul.mubr.bf16.gmra.mrb[40].mxu0 %v4559_v49  ;;  %2064 = vmatprep.mubr.bf16.mxu1 %v4498_v0 }
 0x13d   : > { %2217 = vmatprep.mubr.bf16.mxu0 %v4562_v50 }
 0x143   : > { %2065 = vmatmul.mubr.bf16.gmra.mrb[48].mxu1 %v4562_v50 }
 0x144   : > { %2218 = vmatmul.mubr.bf16.gmra.mrb[44].mxu0 %v4569_v57  ;;  %2072 = vmatprep.mubr.bf16.mxu1 %v4413_v15 }
 0x145   : > { %2225 = vmatprep.mubr.bf16.mxu0 %v4567_v56 }
 0x14b   : > { %2073 = vmatmul.mubr.bf16.gmra.mrb[52].mxu1 %v4567_v56 }
 0x14c   : > { %2226 = vmatmul.mubr.bf16.gmra.mrb[48].mxu0 %v4575_v62  ;;  %2080 = vmatprep.mubr.bf16.mxu1 %v4410_v11 }
 0x14d   : > { %2233 = vmatprep.mubr.bf16.mxu0 %v4578_v63 }
 0x153   : > { %2081 = vmatmul.mubr.bf16.gmra.mrb[56].mxu1 %v4578_v63 }
 0x154   : > { %2234 = vmatmul.mubr.bf16.gmra.mrb[52].mxu0 %v4585_v13  ;;  %2088 = vmatprep.mubr.bf16.mxu1 %v4439_v54 }
 0x155   : > { %2241 = vmatprep.mubr.bf16.mxu0 %v4583_v12 }
 0x15b   : > { %2089 = vmatmul.mubr.bf16.gmra.mrb[60].mxu1 %v4583_v12 }
 0x15c   : > { %2242 = vmatmul.mubr.bf16.gmra.mrb[56].mxu0 %v4595_v34  ;;  %2096 = vmatprep.mubr.bf16.mxu1 %v4433_v48 }
 0x15d   : > { %2249 = vmatprep.mubr.bf16.mxu0 %v4598_v36 }
 0x163   : > { %2097 = vmatmul.mubr.bf16.gmra.mrb[64].mxu1 %v4598_v36 }
 0x164   : > { %2250 = vmatmul.mubr.bf16.gmra.mrb[60].mxu0 %v4605_v47  ;;  %2104 = vmatprep.mubr.bf16.mxu1 %v4476_v31 }
 0x165   : > { %2257 = vmatprep.mubr.bf16.mxu0 %v4603_v44 }
 0x16b   : > { %2105 = vmatmul.mubr.bf16.gmra.mrb[68].mxu1 %v4603_v44 }
 0x16c   : > { %2258 = vmatmul.mubr.bf16.gmra.mrb[64].mxu0 %v4611_v58  ;;  %2112 = vmatprep.mubr.bf16.mxu1 %v4471_v26 }
 0x16d   : > { %2265 = vmatprep.mubr.bf16.mxu0 %v4614_v59 }
 0x173   : > { %2113 = vmatmul.mubr.bf16.gmra.mrb[72].mxu1 %v4614_v59 }
 0x174   : > { %2266 = vmatmul.mubr.bf16.gmra.mrb[68].mxu0 %v4621_v10  ;;  %2120 = vmatprep.mubr.bf16.mxu1 %v4509_v6 }
 0x175   : > { %2273 = vmatprep.mubr.bf16.mxu0 %v4619_v7 }
 0x17b   : > { %2121 = vmatmul.mubr.bf16.gmra.mrb[76].mxu1 %v4619_v7 }
 0x17c   : > { %2274 = vmatmul.mubr.bf16.gmra.mrb[72].mxu0 %v4627_v23  ;;  %2322 = vmatprep.mubr.bf16.mxu1 %v4473_v27  ;;  %v4071_v27 = vld [vmem:[%s5087_s3 + $0x210] sm:$0xff]  }
 0x17d   : > { %2281 = vmatprep.mubr.bf16.mxu0 %v4630_v25 }
 0x183   : > { %2323 = vmatmul.mubr.bf16.vlgmr.msra.gmra.mrb[80].mxu1 %v952_v43 }
 0x184   : > { %2282 = vmatmul.mubr.bf16.gmra.mrb[76].mxu0 %v4635_v51  ;;  %3877 = vmatpush3.bf16.msra.mxu1 %v4404_v1  ;;  %v4073_v1 = vld [vmem:[%s5087_s3 + $0x220] sm:$0xff]  }
 0x185   : > { %2330 = vmatprep.mubr.bf16.mxu1 %v4507_v5  ;;  %2483 = vmatprep.mubr.bf16.mxu0 %v1145_v53  ;;  %v1117_v5 = vld [vmem:[#allocation2 + $0x61] sm:$0xff] }
 0x186   : > { %3878 = vmatprep.subr.bf16.mxu1 %v4070_v52  ;;  %v1147_v35 = vpack.c.bf16 %v1118_v3, %v1117_v5 }
 0x188   : > { %3879 = vmatpush3.bf16.msra.mxu1 %v4070_v52 }
 0x189   : > { %3880 = vmatprep.subr.bf16.mxu1 %v4071_v27 }
 0x18b   : > { %2331 = vmatmul.mubr.bf16.gmra.mrb[84].mxu1 %v1145_v53 }
 0x18c   : > { %2484 = vmatmul.mubr.bf16.vlgmr.msra.gmra.mrb[80].mxu0 %v4441_v55  ;;  %2338 = vmatprep.mubr.bf16.mxu1 %v4531_v19  ;;  %v4075_v55 = vld [vmem:[%s5087_s3 + $0x230] sm:$0xff]   ;;  %v4076_v19 = vld [vmem:[%s5087_s3 + $0x238] sm:$0xff]  }
 0x18d   : > { %2491 = vmatprep.mubr.bf16.mxu0 %v1146_v2  ;;  %3881 = vmatpush3.bf16.msra.mxu1 %v4071_v27 }
 0x18e   : > { %3882 = vmatprep.subr.bf16.mxu1 %v4072_v61 }
 0x191   : > { %3883 = vmatpush3.bf16.msra.mxu1 %v4072_v61  ;;  %v4078_v61 = vld [vmem:[%s5089_s5 + $0x8] sm:$0xff]  }
 0x192   : > { %3884 = vmatprep.subr.bf16.mxu1 %v4073_v1 }
 0x193   : > { %2339 = vmatmul.mubr.bf16.gmra.mrb[88].mxu1 %v1146_v2 }
 0x194   : > { %2492 = vmatmul.mubr.bf16.gmra.mrb[84].mxu0 %v4464_v22  ;;  %2346 = vmatprep.mubr.bf16.mxu1 %v4543_v32  ;;  %v930_v22 = vld [vmem:[#allocation2 + $0x91] sm:$0xff] }
 0x195   : > { %2499 = vmatprep.mubr.bf16.mxu0 %v1147_v35  ;;  %3885 = vmatpush3.bf16.msra.mxu1 %v4073_v1  ;;  %v957_v32 = vpack.c.bf16 %v4454_v8, %v930_v22 }
 0x196   : > { %3886 = vmatprep.subr.bf16.mxu1 %v4074_v14 }
 0x199   : > { %3887 = vmatpush3.bf16.msra.mxu1 %v4074_v14 }
 0x19a   : > { %3888 = vmatprep.subr.bf16.mxu1 %v4075_v55 }
 0x19b   : > { %2347 = vmatmul.mubr.bf16.gmra.mrb[92].mxu1 %v1147_v35  ;;  %v1143_v35 = vld [vmem:[#allocation2 + $0x199] sm:$0xff] }
 0x19c   : > { %2500 = vmatmul.mubr.bf16.gmra.mrb[88].mxu0 %v4515_v9  ;;  %2354 = vmatprep.mubr.bf16.mxu1 %v4553_v40  ;;  %v4077_v40 = vld [vmem:[%s5089_s5] sm:$0xff]  }
 0x19d   : > { %2507 = vmatprep.mubr.bf16.mxu0 %v4466_v24  ;;  %3889 = vmatpush3.bf16.msra.mxu1 %v4075_v55  ;;  %v1144_v55 = vld [vmem:[#allocation2 + $0x1a1] sm:$0xff] }
 0x19e   : > { %3890 = vmatprep.subr.bf16.mxu1 %v4076_v19  ;;  %3924 = vmatprep.subr.bf16.mxu0 %v4077_v40 }
 0x19f   : > { %3925 = vmatpush3.bf16.msra.mxu0 %v4077_v40 }
 0x1a0   : > { %3926 = vmatprep.subr.bf16.mxu0 %v4078_v61 }
 0x1a1   : > { %3891 = vmatpush3.bf16.msra.mxu1 %v4076_v19 }
 0x1a3   : > { %2355 = vmatmul.mubr.bf16.gmra.mrb[96].mxu1 %v4466_v24  ;;  %3927 = vmatpush3.bf16.msra.mxu0 %v4078_v61  ;;  %v1186_v61 = vld [vmem:[#allocation2 + $0x9a] sm:$0xff] }
 0x1a4   : > { %2508 = vmatmul.mubr.bf16.gmra.mrb[92].mxu0 %v4526_v18  ;;  %2362 = vmatprep.mubr.bf16.mxu1 %v4559_v49 }
 0x1a5   : > { %2515 = vmatprep.mubr.bf16.mxu0 %v4462_v20 }
 0x1ab   : > { %2363 = vmatmul.mubr.bf16.gmra.mrb[100].mxu1 %v957_v32  ;;  %v1177_v32 = vld [vmem:[#allocation2 + $0x32] sm:$0xff] }
 0x1ac   : > { %2516 = vmatmul.mubr.bf16.gmra.mrb[96].mxu0 %v4546_v33  ;;  %2370 = vmatprep.mubr.bf16.mxu1 %v4569_v57 }
 0x1ad   : > { %2523 = vmatprep.mubr.bf16.mxu0 %v4500_v46 }
 0x1b3   : > { %2371 = vmatmul.mubr.bf16.gmra.mrb[104].mxu1 %v4500_v46 }
 0x1b4   : > { %2524 = vmatmul.mubr.bf16.gmra.mrb[100].mxu0 %v4551_v39  ;;  %2378 = vmatprep.mubr.bf16.mxu1 %v4575_v62 }
 0x1b5   : > { %2531 = vmatprep.mubr.bf16.mxu0 %v4498_v0 }
 0x1bb   : > { %2379 = vmatmul.mubr.bf16.gmra.mrb[108].mxu1 %v4498_v0 }
 0x1bc   : > { %2532 = vmatmul.mubr.bf16.gmra.mrb[104].mxu0 %v4562_v50  ;;  %2386 = vmatprep.mubr.bf16.mxu1 %v4585_v13 }
 0x1bd   : > { %2539 = vmatprep.mubr.bf16.mxu0 %v4413_v15 }
 0x1c3   : > { %2387 = vmatmul.mubr.bf16.gmra.mrb[112].mxu1 %v4413_v15 }
 0x1c4   : > { %2540 = vmatmul.mubr.bf16.gmra.mrb[108].mxu0 %v4567_v56  ;;  %2394 = vmatprep.mubr.bf16.mxu1 %v4595_v34 }
 0x1c5   : > { %2547 = vmatprep.mubr.bf16.mxu0 %v4410_v11 }
 0x1cb   : > { %2395 = vmatmul.mubr.bf16.gmra.mrb[116].mxu1 %v4410_v11  ;;  %v4704_v11 = vld [vmem:[%s5088_s4] ss:$0 sm:$0xff] }
 0x1cc   : > { %2548 = vmatmul.mubr.bf16.gmra.mrb[112].mxu0 %v4578_v63  ;;  %2402 = vmatprep.mubr.bf16.mxu1 %v4605_v47  ;;  %v2006_v49 = vadd.f32 %v4593_v28, %v4704_v11 }
 0x1cd   : > { %2555 = vmatprep.mubr.bf16.mxu0 %v4439_v54 }
 0x1d3   : > { %2403 = vmatmul.mubr.bf16.gmra.mrb[120].mxu1 %v4439_v54 }
 0x1d4   : > { %2556 = vmatmul.mubr.bf16.gmra.mrb[116].mxu0 %v4583_v12  ;;  %2410 = vmatprep.mubr.bf16.mxu1 %v4611_v58 }
 0x1d5   : > { %2563 = vmatprep.mubr.bf16.mxu0 %v4433_v48 }
 0x1db   : > { %2411 = vmatmul.mubr.bf16.gmra.mrb[124].mxu1 %v4433_v48  ;;  %v2003_v48 = vadd.f32 %v4591_v17, %v4704_v11 }
 0x1dc   : > { %2564 = vmatmul.mubr.bf16.gmra.mrb[120].mxu0 %v4598_v36  ;;  %2418 = vmatprep.mubr.bf16.mxu1 %v4621_v10 }
 0x1dd   : > { %2571 = vmatprep.mubr.bf16.mxu0 %v4476_v31 }
 0x1de   : > { %v3354_v15 = vpop.f32.mrb[20].mxu1 }
 0x1df   : > { %v3460_v54 = vpop.f32.mrb[16].mxu0  ;;  %v3355_v8 = vpop.f32.mrb[21].mxu1 }
 0x1e0   : > { %v3356_v20 = vadd.f32 %v3355_v8, %v3354_v15  ;;  %v3461_v24 = vpop.f32.mrb[17].mxu0  ;;  %v3357_v0 = vpop.f32.mrb[22].mxu1  ;;  %v1178_v15 = vld [vmem:[#allocation2 + $0x3a] sm:$0xff] }
 0x1e1   : > { %v3462_v46 = vadd.f32 %v3461_v24, %v3460_v54  ;;  %v3463_v9 = vpop.f32.mrb[18].mxu0  ;;  %v3358_v18 = vpop.f32.mrb[23].mxu1 }
 0x1e2   : > { %v3359_v33 = vadd.f32 %v3358_v18, %v3357_v0  ;;  %v3464_v39 = vpop.f32.mrb[19].mxu0  ;;  %v2011_v34 = vadd.f32 %v3356_v20, %v4704_v11  ;;  %v1209_v18 = vpack.c.bf16 %v1178_v15, %v1177_v32 }
 0x1e3   : > { %v4713_v50 = vadd.f32 %v3462_v46, %v2003_v48  ;;  %v3465_v56 = vadd.f32 %v3464_v39, %v3463_v9  ;;  %2419 = vmatmul.mubr.bf16.gmra.mrb[128].mxu1 %v4476_v31  ;;  %v1160_v48 = vpack.c.bf16 %v1144_v55, %v1143_v35 }
 0x1e4   : > { %2572 = vmatmul.mubr.bf16.gmra.mrb[124].mxu0 %v4603_v44  ;;  %2426 = vmatprep.mubr.bf16.mxu1 %v4627_v23  ;;  %v2014_v10 = vadd.f32 %v3359_v33, %v4704_v11 }
 0x1e5   : > { %v4718_v57 = vadd.f32 %v3465_v56, %v2006_v49  ;;  %2579 = vmatprep.mubr.bf16.mxu0 %v4471_v26 }
 0x1e6   : > { %v3360_v62 = vpop.f32.mrb[24].mxu1 }
 0x1e7   : > { %v3466_v63 = vpop.f32.mrb[20].mxu0  ;;  %v3361_v12 = vpop.f32.mrb[25].mxu1 }
 0x1e8   : > { %v3362_v13 = vadd.f32 %v3361_v12, %v3360_v62  ;;  %v3467_v17 = vpop.f32.mrb[21].mxu0  ;;  %v3363_v28 = vpop.f32.mrb[26].mxu1  ;;  %v1179_v62 = vld [vmem:[#allocation2 + $0x4a] sm:$0xff] }
 0x1e9   : > { %v3468_v36 = vadd.f32 %v3467_v17, %v3466_v63  ;;  %v3469_v31 = vpop.f32.mrb[22].mxu0  ;;  %v3364_v47 = vpop.f32.mrb[27].mxu1  ;;  %v1180_v63 = vld [vmem:[#allocation2 + $0x52] sm:$0xff]  ;;  %v1181_v17 = vld [vmem:[#allocation2 + $0x62] sm:$0xff] }
 0x1ea   : > { %v3365_v44 = vadd.f32 %v3364_v47, %v3363_v28  ;;  %v3470_v58 = vpop.f32.mrb[23].mxu0  ;;  %v2019_v52 = vadd.f32 %v3362_v13, %v4704_v11  ;;  %v1182_v28 = vld [vmem:[#allocation2 + $0x6a] sm:$0xff]  ;;  %v4085_v47 = vld [vmem:[#allocation2] sm:$0xff] }
 0x1eb   : > { %v4723_v16 = vadd.f32 %v3468_v36, %v2011_v34  ;;  %v3471_v41 = vadd.f32 %v3470_v58, %v3469_v31  ;;  %2427 = vmatmul.mubr.bf16.gmra.mrb[132].mxu1 %v4471_v26 }
 0x1ec   : > { %2580 = vmatmul.mubr.bf16.gmra.mrb[128].mxu0 %v4614_v59  ;;  %2434 = vmatprep.mubr.bf16.mxu1 %v4635_v51  ;;  %v4732_v51 = vpack.c.bf16 %v1015_v38, %v1014_v37  ;;  %v2022_v2 = vadd.f32 %v3365_v44, %v4704_v11  ;;  %v1096_v44 = vpack.c.bf16 %v4085_v47, %v4085_v47  ;;  %v4079_v37 = vld [vmem:[%s5089_s5 + $0x10] sm:$0xff]  }
 0x1ed   : > { %v4728_v21 = vadd.f32 %v3471_v41, %v2014_v10  ;;  %2587 = vmatprep.mubr.bf16.mxu0 %v4509_v6  ;;  %v1210_v41 = vpack.c.bf16 %v1180_v63, %v1179_v62  ;;  %3928 = vmatprep.subr.bf16.mxu0 %v4079_v37 }
 0x1ee   : > { %v3366_v23 = vpop.f32.mrb[28].mxu1  ;;  %3929 = vmatpush3.bf16.msra.mxu0 %v4079_v37 }
 0x1ef   : > { %v3472_v29 = vpop.f32.mrb[24].mxu0  ;;  %v3367_v30 = vpop.f32.mrb[29].mxu1 }
 0x1f0   : > { %v3368_v42 = vadd.f32 %v3367_v30, %v3366_v23  ;;  %v3473_v43 = vpop.f32.mrb[25].mxu0  ;;  %v3369_v45 = vpop.f32.mrb[30].mxu1  ;;  %v1211_v30 = vpack.c.bf16 %v1182_v28, %v1181_v17 }
 0x1f1   : > { %v3474_v53 = vadd.f32 %v3473_v43, %v3472_v29  ;;  %v3475_v26 = vpop.f32.mrb[26].mxu0  ;;  %v3370_v27 = vpop.f32.mrb[31].mxu1 }
 0x1f2   : > { %v3371_v59 = vadd.f32 %v3370_v27, %v3369_v45  ;;  %v3476_v60 = vpop.f32.mrb[27].mxu0 }
 0x1f3   : > { %v4738_v1 = vadd.f32 %v3474_v53, %v2019_v52  ;;  %v3477_v5 = vadd.f32 %v3476_v60, %v3475_v26  ;;  %2435 = vmatmul.mubr.bf16.gmra.mrb[136].mxu1 %v4509_v6  ;;  %v1183_v53 = vld [vmem:[#allocation2 + $0x7a] sm:$0xff]  ;;  %v1184_v26 = vld [vmem:[#allocation2 + $0x82] sm:$0xff]  ;;  %v1185_v60 = vld [vmem:[#allocation2 + $0x92] sm:$0xff] }
 0x1f4   : > { %2588 = vmatmul.mubr.bf16.gmra.mrb[132].mxu0 %v4619_v7  ;;  %2442 = vmatprep.mubr.bf16.mxu1 %v4732_v51  ;;  %v2027_v7 = vadd.f32 %v3368_v42, %v4704_v11  ;;  %v2030_v33 = vadd.f32 %v3371_v59, %v4704_v11  ;;  %v1212_v32 = vpack.c.bf16 %v1184_v26, %v1183_v53 }
 0x1f5   : > { %v4743_v3 = vadd.f32 %v3477_v5, %v2022_v2  ;;  %2595 = vmatprep.mubr.bf16.mxu0 %v4505_v4 }
 0x1f6   : > { %v3372_v14 = vpop.f32.mrb[32].mxu1 }
 0x1f7   : > { %v3478_v19 = vpop.f32.mrb[28].mxu0  ;;  %v3373_v22 = vpop.f32.mrb[33].mxu1 }
 0x1f8   : > { %v3374_v54 = vadd.f32 %v3373_v22, %v3372_v14  ;;  %v3479_v8 = vpop.f32.mrb[29].mxu0  ;;  %v3375_v6 = vpop.f32.mrb[34].mxu1 }
 0x1f9   : > { %v3480_v20 = vadd.f32 %v3479_v8, %v3478_v19  ;;  %v3481_v24 = vpop.f32.mrb[30].mxu0  ;;  %v3376_v0 = vpop.f32.mrb[35].mxu1  ;;  %v1213_v8 = vpack.c.bf16 %v1186_v61, %v1185_v60 }
 0x1fa   : > { %v3377_v46 = vadd.f32 %v3376_v0, %v3375_v6  ;;  %v3482_v9 = vpop.f32.mrb[31].mxu0 }
 0x1fb   : > { %v4748_v39 = vadd.f32 %v3480_v20, %v2027_v7  ;;  %v3483_v40 = vadd.f32 %v3482_v9, %v3481_v24  ;;  %2443 = vmatmul.mubr.bf16.gmra.mrb[140].mxu1 %v4505_v4  ;;  %v2035_v4 = vadd.f32 %v3374_v54, %v4704_v11 }
 0x1fc   : > { %2596 = vmatmul.mubr.bf16.gmra.mrb[136].mxu0 %v4630_v25  ;;  %3892 = vmatprep.mubr.bf16.mxu1 %v1209_v18  ;;  %v2038_v38 = vadd.f32 %v3377_v46, %v4704_v11  ;;  %v1188_v46 = vld [vmem:[#allocation2 + $0xb2] sm:$0xff] }
 0x1fd   : > { %v4752_v49 = vadd.f32 %v3483_v40, %v2030_v33  ;;  %2603 = vmatprep.mubr.bf16.mxu0 %v1160_v48  ;;  %v1187_v48 = vld [vmem:[#allocation2 + $0xaa] sm:$0xff]  ;;  %v1189_v33 = vld [vmem:[#allocation2 + $0xc2] sm:$0xff] }
 0x1fe   : > { %v3378_v56 = vpop.f32.mrb[36].mxu1  ;;  %v1190_v40 = vld [vmem:[#allocation2 + $0xca] sm:$0xff] }
 0x1ff   : > { %v3484_v12 = vpop.f32.mrb[32].mxu0  ;;  %v3379_v13 = vpop.f32.mrb[37].mxu1  ;;  %v1215_v47 = vpack.c.bf16 %v1190_v40, %v1189_v33 }
 0x200   : > { %v3380_v34 = vadd.f32 %v3379_v13, %v3378_v56  ;;  %v3485_v36 = vpop.f32.mrb[33].mxu0  ;;  %v3381_v31 = vpop.f32.mrb[38].mxu1 }
 0x201   : > { %v3486_v58 = vadd.f32 %v3485_v36, %v3484_v12  ;;  %v3487_v25 = vpop.f32.mrb[34].mxu0  ;;  %v3382_v10 = vpop.f32.mrb[39].mxu1 }
 0x202   : > { %v3383_v23 = vadd.f32 %v3382_v10, %v3381_v31  ;;  %v3488_v29 = vpop.f32.mrb[35].mxu0  ;;  %v2043_v35 = vadd.f32 %v3380_v34, %v4704_v11  ;;  %v1214_v34 = vpack.c.bf16 %v1188_v46, %v1187_v48  ;;  %v1198_v48 = vld [vmem:[#allocation2 + $0x12a] sm:$0xff] }
 0x203   : > { %v4759_v42 = vadd.f32 %v3486_v58, %v2035_v4  ;;  %v3489_v43 = vadd.f32 %v3488_v29, %v3487_v25  ;;  %3893 = vmatmul.mubr.bf16.vlgmr.msra.gmra.mrb[144].mxu1 %v1210_v41  ;;  %v1192_v29 = vld [vmem:[#allocation2 + $0xe2] sm:$0xff] }
 0x204   : > { %2604 = vmatmul.mubr.bf16.gmra.mrb[140].mxu0 %v1096_v44  ;;  %3896 = vmatprep.mubr.bf16.mxu1 %v1211_v30  ;;  %v2046_v6 = vadd.f32 %v3383_v23, %v4704_v11  ;;  %v4080_v44 = vld [vmem:[%s5089_s5 + $0x18] sm:$0xff]  }
 0x205   : > { %v4761_v45 = vadd.f32 %v3489_v43, %v2038_v38  ;;  %3930 = vmatprep.subr.bf16.mxu0 %v4080_v44  ;;  %v1191_v23 = vld [vmem:[#allocation2 + $0xda] sm:$0xff]  ;;  %v1193_v38 = vld [vmem:[#allocation2 + $0xf2] sm:$0xff] }
 0x206   : > { %v3384_v52 = vpop.f32.mrb[40].mxu1  ;;  %3931 = vmatpush3.bf16.msra.mxu0 %v4080_v44  ;;  %v1194_v43 = vld [vmem:[#allocation2 + $0xfa] sm:$0xff] }
 0x207   : > { %v3490_v27 = vpop.f32.mrb[36].mxu0  ;;  %v3385_v59 = vpop.f32.mrb[41].mxu1 }
 0x208   : > { %v3386_v2 = vadd.f32 %v3385_v59, %v3384_v52  ;;  %v3491_v5 = vpop.f32.mrb[37].mxu0  ;;  %v3387_v14 = vpop.f32.mrb[42].mxu1 }
 0x209   : > { %v3492_v55 = vadd.f32 %v3491_v5, %v3490_v27  ;;  %v3493_v19 = vpop.f32.mrb[38].mxu0  ;;  %v3388_v22 = vpop.f32.mrb[43].mxu1 }
 0x20a   : > { %v3389_v15 = vadd.f32 %v3388_v22, %v3387_v14  ;;  %v3494_v54 = vpop.f32.mrb[39].mxu0  ;;  %v2051_v12 = vadd.f32 %v3386_v2, %v4704_v11  ;;  %v1216_v2 = vpack.c.bf16 %v1192_v29, %v1191_v23  ;;  %v1201_v29 = vld [vmem:[#allocation2 + $0x152] sm:$0xff] }
 0x20b   : > { %v4765_v7 = vadd.f32 %v3492_v55, %v2043_v35  ;;  %v3495_v20 = vadd.f32 %v3494_v54, %v3493_v19  ;;  %3897 = vmatmul.mubr.bf16.gmra.mrb[148].mxu1 %v1212_v32  ;;  %v1217_v35 = vpack.c.bf16 %v1194_v43, %v1193_v38  ;;  %v1195_v54 = vld [vmem:[#allocation2 + $0x10a] sm:$0xff] }
 0x20c   : > { %3900 = vmatprep.mubr.bf16.mxu1 %v1213_v8  ;;  %v2054_v4 = vadd.f32 %v3389_v15, %v4704_v11  ;;  %v1196_v8 = vld [vmem:[#allocation2 + $0x112] sm:$0xff] }
 0x20d   : > { %v4767_v24 = vadd.f32 %v3495_v20, %v2046_v6 }
 0x20e   : > { %v3390_v0 = vpop.f32.mrb[44].mxu1 }
 0x20f   : > { %v3496_v9 = vpop.f32.mrb[40].mxu0  ;;  %v3391_v18 = vpop.f32.mrb[45].mxu1 }
 0x210   : > { %v3392_v56 = vadd.f32 %v3391_v18, %v3390_v0  ;;  %v3497_v62 = vpop.f32.mrb[41].mxu0  ;;  %v3393_v63 = vpop.f32.mrb[46].mxu1  ;;  %v1197_v0 = vld [vmem:[#allocation2 + $0x122] sm:$0xff] }
 0x211   : > { %v3498_v13 = vadd.f32 %v3497_v62, %v3496_v9  ;;  %v3499_v17 = vpop.f32.mrb[42].mxu0  ;;  %v3394_v28 = vpop.f32.mrb[47].mxu1 }
 0x212   : > { %v3395_v36 = vadd.f32 %v3394_v28, %v3393_v63  ;;  %v3500_v31 = vpop.f32.mrb[43].mxu0  ;;  %v2059_v27 = vadd.f32 %v3392_v56, %v4704_v11  ;;  %v1218_v63 = vpack.c.bf16 %v1196_v8, %v1195_v54  ;;  %v4081_v28 = vld [vmem:[%s5089_s5 + $0x20] sm:$0xff]   ;;  %v1204_v54 = vld [vmem:[#allocation2 + $0x172] sm:$0xff] }
 0x213   : > { %v4774_v58 = vadd.f32 %v3498_v13, %v2051_v12  ;;  %v3501_v25 = vadd.f32 %v3500_v31, %v3499_v17  ;;  %3901 = vmatmul.mubr.bf16.gmra.mrb[152].mxu1 %v1214_v34  ;;  %v1219_v17 = vpack.c.bf16 %v1198_v48, %v1197_v0  ;;  %3932 = vmatprep.subr.bf16.mxu0 %v4081_v28 }
 0x214   : > { %3904 = vmatprep.mubr.bf16.mxu1 %v1215_v47  ;;  %v2062_v55 = vadd.f32 %v3395_v36, %v4704_v11  ;;  %3933 = vmatpush3.bf16.msra.mxu0 %v4081_v28  ;;  %v1207_v28 = vld [vmem:[#allocation2 + $0x19a] sm:$0xff] }
 0x215   : > { %v4776_v10 = vadd.f32 %v3501_v25, %v2054_v4  ;;  %v1199_v4 = vld [vmem:[#allocation2 + $0x13a] sm:$0xff]  ;;  %v1200_v25 = vld [vmem:[#allocation2 + $0x142] sm:$0xff] }
 0x216   : > { %v3396_v41 = vpop.f32.mrb[48].mxu1 }
 0x217   : > { %v3502_v30 = vpop.f32.mrb[44].mxu0  ;;  %v3397_v37 = vpop.f32.mrb[49].mxu1 }
 0x218   : > { %v3398_v52 = vadd.f32 %v3397_v37, %v3396_v41  ;;  %v3503_v53 = vpop.f32.mrb[45].mxu0  ;;  %v3399_v26 = vpop.f32.mrb[50].mxu1 }
 0x219   : > { %v3504_v59 = vadd.f32 %v3503_v53, %v3502_v30  ;;  %v3505_v60 = vpop.f32.mrb[46].mxu0  ;;  %v3400_v61 = vpop.f32.mrb[51].mxu1  ;;  %v1202_v30 = vld [vmem:[#allocation2 + $0x15a] sm:$0xff] }
 0x21a   : > { %v3401_v5 = vadd.f32 %v3400_v61, %v3399_v26  ;;  %v3506_v14 = vpop.f32.mrb[47].mxu0  ;;  %v2067_v33 = vadd.f32 %v3398_v52, %v4704_v11 }
 0x21b   : > { %v4780_v19 = vadd.f32 %v3504_v59, %v2059_v27  ;;  %v3507_v22 = vadd.f32 %v3506_v14, %v3505_v60  ;;  %3905 = vmatmul.mubr.bf16.gmra.mrb[156].mxu1 %v1216_v2  ;;  %v1220_v59 = vpack.c.bf16 %v1200_v25, %v1199_v4  ;;  %v1221_v2 = vpack.c.bf16 %v1202_v30, %v1201_v29 }
 0x21c   : > { %3908 = vmatprep.mubr.bf16.mxu1 %v1217_v35  ;;  %v2070_v34 = vadd.f32 %v3401_v5, %v4704_v11 }
 0x21d   : > { %v4782_v32 = vadd.f32 %v3507_v22, %v2062_v55 }
 0x21e   : > { %v3402_v15 = vpop.f32.mrb[52].mxu1 }
 0x21f   : > { %v3508_v6 = vpop.f32.mrb[48].mxu0  ;;  %v3403_v20 = vpop.f32.mrb[53].mxu1 }
 0x220   : > { %v3404_v46 = vadd.f32 %v3403_v20, %v3402_v15  ;;  %v3509_v9 = vpop.f32.mrb[49].mxu0  ;;  %v3405_v18 = vpop.f32.mrb[54].mxu1  ;;  %v1203_v15 = vld [vmem:[#allocation2 + $0x16a] sm:$0xff] }
 0x221   : > { %v3510_v40 = vadd.f32 %v3509_v9, %v3508_v6  ;;  %v3511_v56 = vpop.f32.mrb[50].mxu0  ;;  %v3406_v62 = vpop.f32.mrb[55].mxu1 }
 0x222   : > { %v3407_v12 = vadd.f32 %v3406_v62, %v3405_v18  ;;  %v3512_v13 = vpop.f32.mrb[51].mxu0  ;;  %v2075_v52 = vadd.f32 %v3404_v46, %v4704_v11 }
 0x223   : > { %v4789_v36 = vadd.f32 %v3510_v40, %v2067_v33  ;;  %v3513_v31 = vadd.f32 %v3512_v13, %v3511_v56  ;;  %3909 = vmatmul.mubr.bf16.gmra.mrb[160].mxu1 %v1218_v63  ;;  %v1222_v40 = vpack.c.bf16 %v1204_v54, %v1203_v15  ;;  %v4082_v63 = vld [vmem:[%s5089_s5 + $0x28] sm:$0xff]  }
 0x224   : > { %3912 = vmatprep.mubr.bf16.mxu1 %v1219_v17  ;;  %v2078_v5 = vadd.f32 %v3407_v12, %v4704_v11  ;;  %3934 = vmatprep.subr.bf16.mxu0 %v4082_v63 }
 0x225   : > { %v4791_v47 = vadd.f32 %v3513_v31, %v2070_v34  ;;  %v1208_v34 = vld [vmem:[#allocation2 + $0x1a2] sm:$0xff]  ;;  %3935 = vmatpush3.bf16.msra.mxu0 %v4082_v63 }
 0x226   : > { %v3408_v44 = vpop.f32.mrb[56].mxu1 }
 0x227   : > { %v3514_v41 = vpop.f32.mrb[52].mxu0  ;;  %v3409_v23 = vpop.f32.mrb[57].mxu1 }
 0x228   : > { %v3410_v37 = vadd.f32 %v3409_v23, %v3408_v44  ;;  %v3515_v38 = vpop.f32.mrb[53].mxu0  ;;  %v3411_v43 = vpop.f32.mrb[58].mxu1 }
 0x229   : > { %v3516_v53 = vadd.f32 %v3515_v38, %v3514_v41  ;;  %v3517_v26 = vpop.f32.mrb[54].mxu0  ;;  %v3412_v27 = vpop.f32.mrb[59].mxu1  ;;  %v1224_v41 = vpack.c.bf16 %v1208_v34, %v1207_v28 }
 0x22a   : > { %v3413_v60 = vadd.f32 %v3412_v27, %v3411_v43  ;;  %v3518_v61 = vpop.f32.mrb[55].mxu0  ;;  %v2083_v46 = vadd.f32 %v3410_v37, %v4704_v11 }
 0x22b   : > { %v4795_v14 = vadd.f32 %v3516_v53, %v2075_v52  ;;  %v3519_v35 = vadd.f32 %v3518_v61, %v3517_v26  ;;  %3913 = vmatmul.mubr.bf16.gmra.mrb[164].mxu1 %v1220_v59 }
 0x22c   : > { %3916 = vmatprep.mubr.bf16.mxu1 %v1221_v2  ;;  %v2086_v12 = vadd.f32 %v3413_v60, %v4704_v11 }
 0x22d   : > { %v4797_v55 = vadd.f32 %v3519_v35, %v2078_v5 }
 0x22e   : > { %v3414_v22 = vpop.f32.mrb[60].mxu1 }
 0x22f   : > { %v3520_v8 = vpop.f32.mrb[56].mxu0  ;;  %v3415_v6 = vpop.f32.mrb[61].mxu1 }
 0x230   : > { %v3416_v20 = vadd.f32 %v3415_v6, %v3414_v22  ;;  %v3521_v0 = vpop.f32.mrb[57].mxu0  ;;  %v3417_v48 = vpop.f32.mrb[62].mxu1 }
 0x231   : > { %v3522_v9 = vadd.f32 %v3521_v0, %v3520_v8  ;;  %v3523_v18 = vpop.f32.mrb[58].mxu0  ;;  %v3418_v33 = vpop.f32.mrb[63].mxu1 }
 0x232   : > { %v3419_v56 = vadd.f32 %v3418_v33, %v3417_v48  ;;  %v3524_v62 = vpop.f32.mrb[59].mxu0  ;;  %v2091_v37 = vadd.f32 %v3416_v20, %v4704_v11 }
 0x233   : > { %v4804_v13 = vadd.f32 %v3522_v9, %v2083_v46  ;;  %v3525_v17 = vadd.f32 %v3524_v62, %v3523_v18  ;;  %3917 = vmatmul.mubr.bf16.gmra.mrb[168].mxu1 %v1222_v40  ;;  %v4083_v46 = vld [vmem:[%s5089_s5 + $0x30] sm:$0xff]  }
 0x234   : > { %3920 = vmatprep.mubr.bf16.mxu1 %v4732_v51  ;;  %v2094_v26 = vadd.f32 %v3419_v56, %v4704_v11  ;;  %3936 = vmatprep.subr.bf16.mxu0 %v4083_v46 }
 0x235   : > { %v4807_v31 = vadd.f32 %v3525_v17, %v2086_v12  ;;  %3937 = vmatpush3.bf16.msra.mxu0 %v4083_v46 }
 0x236   : > { %v3420_v44 = vpop.f32.mrb[64].mxu1 }
 0x237   : > { %v3526_v4 = vpop.f32.mrb[60].mxu0  ;;  %v3421_v25 = vpop.f32.mrb[65].mxu1 }
 0x238   : > { %v3422_v23 = vadd.f32 %v3421_v25, %v3420_v44  ;;  %v3527_v29 = vpop.f32.mrb[61].mxu0  ;;  %v3423_v30 = vpop.f32.mrb[66].mxu1 }
 0x239   : > { %v3528_v38 = vadd.f32 %v3527_v29, %v3526_v4  ;;  %v3529_v43 = vpop.f32.mrb[62].mxu0  ;;  %v3424_v52 = vpop.f32.mrb[67].mxu1 }
 0x23a   : > { %v3425_v53 = vadd.f32 %v3424_v52, %v3423_v30  ;;  %v3530_v51 = vpop.f32.mrb[63].mxu0  ;;  %v2099_v54 = vadd.f32 %v3422_v23, %v4704_v11 }
 0x23b   : > { %v4811_v27 = vadd.f32 %v3528_v38, %v2091_v37  ;;  %v3531_v59 = vadd.f32 %v3530_v51, %v3529_v43  ;;  %3921 = vmatmul.mubr.bf16.gmra.mrb[172].mxu1 %v1224_v41 }
 0x23c   : > { %v2102_v9 = vadd.f32 %v3425_v53, %v4704_v11 }
 0x23d   : > { %v4813_v60 = vadd.f32 %v3531_v59, %v2094_v26 }
 0x23e   : > { %v3426_v61 = vpop.f32.mrb[68].mxu1 }
 0x23f   : > { %v3532_v2 = vpop.f32.mrb[64].mxu0  ;;  %v3427_v5 = vpop.f32.mrb[69].mxu1 }
 0x240   : > { %v3428_v35 = vadd.f32 %v3427_v5, %v3426_v61  ;;  %v3533_v22 = vpop.f32.mrb[65].mxu0  ;;  %v3429_v15 = vpop.f32.mrb[70].mxu1 }
 0x241   : > { %v3534_v8 = vadd.f32 %v3533_v22, %v3532_v2  ;;  %v3535_v6 = vpop.f32.mrb[66].mxu0  ;;  %v3430_v20 = vpop.f32.mrb[71].mxu1 }
 0x242   : > { %v3431_v0 = vadd.f32 %v3430_v20, %v3429_v15  ;;  %v3536_v48 = vpop.f32.mrb[67].mxu0  ;;  %v2107_v34 = vadd.f32 %v3428_v35, %v4704_v11 }
 0x243   : > { %v4820_v18 = vadd.f32 %v3534_v8, %v2099_v54  ;;  %v3537_v33 = vadd.f32 %v3536_v48, %v3535_v6  ;;  %v4084_v54 = vld [vmem:[%s5089_s5 + $0x38] sm:$0xff]  }
 0x244   : > { %v2110_v29 = vadd.f32 %v3431_v0, %v4704_v11  ;;  %3938 = vmatprep.subr.bf16.mxu0 %v4084_v54 }
 0x245   : > { %v4822_v40 = vadd.f32 %v3537_v33, %v2102_v9  ;;  %3939 = vmatpush3.bf16.msra.mxu0 %v4084_v54 }
 0x246   : > { %v3432_v56 = vpop.f32.mrb[72].mxu1 }
 0x247   : > { %v3538_v62 = vpop.f32.mrb[68].mxu0  ;;  %v3433_v63 = vpop.f32.mrb[73].mxu1 }
 0x248   : > { %v3434_v12 = vadd.f32 %v3433_v63, %v3432_v56  ;;  %v3539_v17 = vpop.f32.mrb[69].mxu0  ;;  %v3435_v28 = vpop.f32.mrb[74].mxu1 }
 0x249   : > { %v3540_v44 = vadd.f32 %v3539_v17, %v3538_v62  ;;  %v3541_v4 = vpop.f32.mrb[70].mxu0  ;;  %v3436_v25 = vpop.f32.mrb[75].mxu1 }
 0x24a   : > { %v3437_v41 = vadd.f32 %v3436_v25, %v3435_v28  ;;  %v3542_v23 = vpop.f32.mrb[71].mxu0  ;;  %v2115_v61 = vadd.f32 %v3434_v12, %v4704_v11 }
 0x24b   : > { %v4826_v30 = vadd.f32 %v3540_v44, %v2107_v34  ;;  %v3543_v37 = vadd.f32 %v3542_v23, %v3541_v4 }
 0x24c   : > { %v2118_v8 = vadd.f32 %v3437_v41, %v4704_v11 }
 0x24d   : > { %v4828_v38 = vadd.f32 %v3543_v37, %v2110_v29 }
 0x24e   : > { %v3438_v43 = vpop.f32.mrb[76].mxu1 }
 0x24f   : > { %v3544_v52 = vpop.f32.mrb[72].mxu0  ;;  %v3439_v53 = vpop.f32.mrb[77].mxu1 }
 0x250   : > { %v3440_v51 = vadd.f32 %v3439_v53, %v3438_v43  ;;  %v3545_v26 = vpop.f32.mrb[73].mxu0  ;;  %v3441_v59 = vpop.f32.mrb[78].mxu1 }
 0x251   : > { %v3546_v2 = vadd.f32 %v3545_v26, %v3544_v52  ;;  %v3547_v5 = vpop.f32.mrb[74].mxu0  ;;  %v3442_v35 = vpop.f32.mrb[79].mxu1 }
 0x252   : > { %v3443_v22 = vadd.f32 %v3442_v35, %v3441_v59  ;;  %v3548_v15 = vpop.f32.mrb[75].mxu0  ;;  %v2123_v63 = vadd.f32 %v3440_v51, %v4704_v11 }
 0x253   : > { %v4835_v6 = vadd.f32 %v3546_v2, %v2115_v61  ;;  %v3549_v20 = vadd.f32 %v3548_v15, %v3547_v5 }
 0x254   : > { %v2126_v25 = vadd.f32 %v3443_v22, %v4704_v11 }
 0x255   : > { %v4837_v0 = vadd.f32 %v3549_v20, %v2118_v8 }
 0x256   : > { %v3572_v48 = vpop.f32.mrb[80].mxu1 }
 0x257   : > { %v3550_v46 = vpop.f32.mrb[76].mxu0  ;;  %v3573_v9 = vpop.f32.mrb[81].mxu1 }
 0x258   : > { %v3551_v33 = vpop.f32.mrb[77].mxu0  ;;  %v3574_v56 = vadd.f32 %v3573_v9, %v3572_v48  ;;  %v3575_v62 = vpop.f32.mrb[82].mxu1 }
 0x259   : > { %v3552_v12 = vadd.f32 %v3551_v33, %v3550_v46  ;;  %v3553_v17 = vpop.f32.mrb[78].mxu0  ;;  %v3576_v28 = vpop.f32.mrb[83].mxu1 }
 0x25a   : > { %v2325_v34 = vadd.f32 %v3574_v56, %v4713_v50  ;;  %v3554_v44 = vpop.f32.mrb[79].mxu0  ;;  %v3577_v4 = vadd.f32 %v3576_v28, %v3575_v62 }
 0x25b   : > { %v4842_v41 = vadd.f32 %v3552_v12, %v2123_v63  ;;  %v3555_v23 = vadd.f32 %v3554_v44, %v3553_v17 }
 0x25c   : > { %v2328_v29 = vadd.f32 %v3577_v4, %v4718_v57 }
 0x25d   : > { %v4845_v37 = vadd.f32 %v3555_v23, %v2126_v25 }
 0x25e   : > { %v3578_v43 = vpop.f32.mrb[84].mxu1 }
 0x25f   : > { %v3684_v52 = vpop.f32.mrb[80].mxu0  ;;  %v3579_v53 = vpop.f32.mrb[85].mxu1 }
 0x260   : > { %v3580_v51 = vadd.f32 %v3579_v53, %v3578_v43  ;;  %v3685_v26 = vpop.f32.mrb[81].mxu0  ;;  %v3581_v59 = vpop.f32.mrb[86].mxu1 }
 0x261   : > { %v3686_v61 = vadd.f32 %v3685_v26, %v3684_v52  ;;  %v3687_v2 = vpop.f32.mrb[82].mxu0  ;;  %v3582_v50 = vpop.f32.mrb[87].mxu1 }
 0x262   : > { %v2333_v5 = vadd.f32 %v3580_v51, %v4723_v16  ;;  %v3583_v35 = vadd.f32 %v3582_v50, %v3581_v59  ;;  %v3688_v11 = vpop.f32.mrb[83].mxu0 }
 0x263   : > { %v3689_v22 = vadd.f32 %v3688_v11, %v3687_v2  ;;  %v4848_v15 = vadd.f32 %v3686_v61, %v2325_v34 }
 0x264   : > { %v2336_v57 = vadd.f32 %v3583_v35, %v4728_v21 }
 0x265   : > { %v4851_v54 = vadd.f32 %v3689_v22, %v2328_v29 }
 0x266   : > { %v3584_v8 = vpop.f32.mrb[88].mxu1 }
 0x267   : > { %v3690_v20 = vpop.f32.mrb[84].mxu0  ;;  %v3585_v48 = vpop.f32.mrb[89].mxu1 }
 0x268   : > { %v3586_v46 = vadd.f32 %v3585_v48, %v3584_v8  ;;  %v3691_v9 = vpop.f32.mrb[85].mxu0  ;;  %v3587_v33 = vpop.f32.mrb[90].mxu1 }
 0x269   : > { %v3692_v56 = vadd.f32 %v3691_v9, %v3690_v20  ;;  %v3693_v62 = vpop.f32.mrb[86].mxu0  ;;  %v3588_v63 = vpop.f32.mrb[91].mxu1 }
 0x26a   : > { %v2341_v16 = vadd.f32 %v3586_v46, %v4738_v1  ;;  %v3589_v12 = vadd.f32 %v3588_v63, %v3587_v33  ;;  %v3694_v17 = vpop.f32.mrb[87].mxu0 }
 0x26b   : > { %v3695_v28 = vadd.f32 %v3694_v17, %v3693_v62  ;;  %v4854_v34 = vadd.f32 %v3692_v56, %v2333_v5 }
 0x26c   : > { %v2344_v21 = vadd.f32 %v3589_v12, %v4743_v3 }
 0x26d   : > { %v4857_v44 = vadd.f32 %v3695_v28, %v2336_v57 }
 0x26e   : > { %v3590_v4 = vpop.f32.mrb[92].mxu1 }
 0x26f   : > { %v3696_v25 = vpop.f32.mrb[88].mxu0  ;;  %v3591_v23 = vpop.f32.mrb[93].mxu1 }
 0x270   : > { %v3592_v29 = vadd.f32 %v3591_v23, %v3590_v4  ;;  %v3697_v43 = vpop.f32.mrb[89].mxu0  ;;  %v3593_v52 = vpop.f32.mrb[94].mxu1 }
 0x271   : > { %v3698_v53 = vadd.f32 %v3697_v43, %v3696_v25  ;;  %v3699_v51 = vpop.f32.mrb[90].mxu0  ;;  %v3594_v26 = vpop.f32.mrb[95].mxu1 }
 0x272   : > { %v2349_v1 = vadd.f32 %v3592_v29, %v4748_v39  ;;  %v3595_v59 = vadd.f32 %v3594_v26, %v3593_v52  ;;  %v3700_v61 = vpop.f32.mrb[91].mxu0 }
 0x273   : > { %v3701_v2 = vadd.f32 %v3700_v61, %v3699_v51  ;;  %v4860_v50 = vadd.f32 %v3698_v53, %v2341_v16 }
 0x274   : > { %v2352_v3 = vadd.f32 %v3595_v59, %v4752_v49 }
 0x275   : > { %v4863_v5 = vadd.f32 %v3701_v2, %v2344_v21 }
 0x276   : > { %v3596_v35 = vpop.f32.mrb[96].mxu1 }
 0x277   : > { %v3702_v11 = vpop.f32.mrb[92].mxu0  ;;  %v3597_v22 = vpop.f32.mrb[97].mxu1 }
 0x278   : > { %v3598_v57 = vadd.f32 %v3597_v22, %v3596_v35  ;;  %v3703_v8 = vpop.f32.mrb[93].mxu0  ;;  %v3599_v20 = vpop.f32.mrb[98].mxu1 }
 0x279   : > { %v3704_v48 = vadd.f32 %v3703_v8, %v3702_v11  ;;  %v3705_v46 = vpop.f32.mrb[94].mxu0  ;;  %v3600_v9 = vpop.f32.mrb[99].mxu1 }
 0x27a   : > { %v2357_v39 = vadd.f32 %v3598_v57, %v4759_v42  ;;  %v3601_v33 = vadd.f32 %v3600_v9, %v3599_v20  ;;  %v3706_v56 = vpop.f32.mrb[95].mxu0 }
 0x27b   : > { %v3707_v62 = vadd.f32 %v3706_v56, %v3705_v46  ;;  %v4866_v63 = vadd.f32 %v3704_v48, %v2349_v1 }
 0x27c   : > { %v2360_v49 = vadd.f32 %v3601_v33, %v4761_v45 }
 0x27d   : > { %v4869_v16 = vadd.f32 %v3707_v62, %v2352_v3 }
 0x27e   : > { %v3602_v12 = vpop.f32.mrb[100].mxu1 }
 0x27f   : > { %v3708_v17 = vpop.f32.mrb[96].mxu0  ;;  %v3603_v28 = vpop.f32.mrb[101].mxu1 }
 0x280   : > { %v3604_v21 = vadd.f32 %v3603_v28, %v3602_v12  ;;  %v3709_v4 = vpop.f32.mrb[97].mxu0  ;;  %v3605_v25 = vpop.f32.mrb[102].mxu1 }
 0x281   : > { %v3710_v23 = vadd.f32 %v3709_v4, %v3708_v17  ;;  %v3711_v29 = vpop.f32.mrb[98].mxu0  ;;  %v3606_v43 = vpop.f32.mrb[103].mxu1 }
 0x282   : > { %v2365_v42 = vadd.f32 %v3604_v21, %v4765_v7  ;;  %v3607_v52 = vadd.f32 %v3606_v43, %v3605_v25  ;;  %v3712_v53 = vpop.f32.mrb[99].mxu0 }
 0x283   : > { %v3713_v51 = vadd.f32 %v3712_v53, %v3711_v29  ;;  %v4872_v26 = vadd.f32 %v3710_v23, %v2357_v39 }
 0x284   : > { %v2368_v45 = vadd.f32 %v3607_v52, %v4767_v24 }
 0x285   : > { %v4875_v1 = vadd.f32 %v3713_v51, %v2360_v49 }
 0x286   : > { %v3608_v59 = vpop.f32.mrb[104].mxu1 }
 0x287   : > { %v3714_v61 = vpop.f32.mrb[100].mxu0  ;;  %v3609_v2 = vpop.f32.mrb[105].mxu1 }
 0x288   : > { %v3610_v3 = vadd.f32 %v3609_v2, %v3608_v59  ;;  %v3715_v35 = vpop.f32.mrb[101].mxu0  ;;  %v3611_v11 = vpop.f32.mrb[106].mxu1 }
 0x289   : > { %v3716_v22 = vadd.f32 %v3715_v35, %v3714_v61  ;;  %v3717_v57 = vpop.f32.mrb[102].mxu0  ;;  %v3612_v8 = vpop.f32.mrb[107].mxu1 }
 0x28a   : > { %v2373_v7 = vadd.f32 %v3610_v3, %v4774_v58  ;;  %v3613_v20 = vadd.f32 %v3612_v8, %v3611_v11  ;;  %v3718_v48 = vpop.f32.mrb[103].mxu0 }
 0x28b   : > { %v3719_v46 = vadd.f32 %v3718_v48, %v3717_v57  ;;  %v4878_v9 = vadd.f32 %v3716_v22, %v2365_v42 }
 0x28c   : > { %v2376_v24 = vadd.f32 %v3613_v20, %v4776_v10 }
 0x28d   : > { %v4881_v39 = vadd.f32 %v3719_v46, %v2368_v45 }
 0x28e   : > { %v3614_v33 = vpop.f32.mrb[108].mxu1 }
 0x28f   : > { %v3720_v56 = vpop.f32.mrb[104].mxu0  ;;  %v3615_v62 = vpop.f32.mrb[109].mxu1 }
 0x290   : > { %v3616_v49 = vadd.f32 %v3615_v62, %v3614_v33  ;;  %v3721_v12 = vpop.f32.mrb[105].mxu0  ;;  %v3617_v17 = vpop.f32.mrb[110].mxu1 }
 0x291   : > { %v3722_v28 = vadd.f32 %v3721_v12, %v3720_v56  ;;  %v3723_v21 = vpop.f32.mrb[106].mxu0  ;;  %v3618_v4 = vpop.f32.mrb[111].mxu1 }
 0x292   : > { %v2381_v58 = vadd.f32 %v3616_v49, %v4780_v19  ;;  %v3619_v25 = vadd.f32 %v3618_v4, %v3617_v17  ;;  %v3724_v23 = vpop.f32.mrb[107].mxu0 }
 0x293   : > { %v3725_v29 = vadd.f32 %v3724_v23, %v3723_v21  ;;  %v4884_v43 = vadd.f32 %v3722_v28, %v2373_v7 }
 0x294   : > { %v2384_v10 = vadd.f32 %v3619_v25, %v4782_v32 }
 0x295   : > { %v4887_v42 = vadd.f32 %v3725_v29, %v2376_v24 }
 0x296   : > { %v3620_v52 = vpop.f32.mrb[112].mxu1 }
 0x297   : > { %v3726_v53 = vpop.f32.mrb[108].mxu0  ;;  %v3621_v51 = vpop.f32.mrb[113].mxu1 }
 0x298   : > { %v3622_v45 = vadd.f32 %v3621_v51, %v3620_v52  ;;  %v3727_v59 = vpop.f32.mrb[109].mxu0  ;;  %v3623_v61 = vpop.f32.mrb[114].mxu1 }
 0x299   : > { %v3728_v2 = vadd.f32 %v3727_v59, %v3726_v53  ;;  %v3729_v3 = vpop.f32.mrb[110].mxu0  ;;  %v3624_v35 = vpop.f32.mrb[115].mxu1 }
 0x29a   : > { %v2389_v19 = vadd.f32 %v3622_v45, %v4789_v36  ;;  %v3625_v11 = vadd.f32 %v3624_v35, %v3623_v61  ;;  %v3730_v22 = vpop.f32.mrb[111].mxu0 }
 0x29b   : > { %v3731_v57 = vadd.f32 %v3730_v22, %v3729_v3  ;;  %v4890_v8 = vadd.f32 %v3728_v2, %v2381_v58 }
 0x29c   : > { %v2392_v32 = vadd.f32 %v3625_v11, %v4791_v47 }
 0x29d   : > { %v4893_v7 = vadd.f32 %v3731_v57, %v2384_v10 }
 0x29e   : > { %v3626_v20 = vpop.f32.mrb[116].mxu1 }
 0x29f   : > { %v3732_v48 = vpop.f32.mrb[112].mxu0  ;;  %v3627_v46 = vpop.f32.mrb[117].mxu1 }
 0x2a0   : > { %v3628_v24 = vadd.f32 %v3627_v46, %v3626_v20  ;;  %v3733_v33 = vpop.f32.mrb[113].mxu0  ;;  %v3629_v56 = vpop.f32.mrb[118].mxu1 }
 0x2a1   : > { %v3734_v62 = vadd.f32 %v3733_v33, %v3732_v48  ;;  %v3735_v49 = vpop.f32.mrb[114].mxu0  ;;  %v3630_v12 = vpop.f32.mrb[119].mxu1 }
 0x2a2   : > { %v2397_v36 = vadd.f32 %v3628_v24, %v4795_v14  ;;  %v3631_v17 = vadd.f32 %v3630_v12, %v3629_v56  ;;  %v3736_v28 = vpop.f32.mrb[115].mxu0 }
 0x2a3   : > { %v3737_v21 = vadd.f32 %v3736_v28, %v3735_v49  ;;  %v4896_v4 = vadd.f32 %v3734_v62, %v2389_v19 }
 0x2a4   : > { %v2400_v47 = vadd.f32 %v3631_v17, %v4797_v55 }
 0x2a5   : > { %v4899_v58 = vadd.f32 %v3737_v21, %v2392_v32 }
 0x2a6   : > { %v3632_v25 = vpop.f32.mrb[120].mxu1 }
 0x2a7   : > { %v3738_v23 = vpop.f32.mrb[116].mxu0  ;;  %v3633_v29 = vpop.f32.mrb[121].mxu1 }
 0x2a8   : > { %v3634_v10 = vadd.f32 %v3633_v29, %v3632_v25  ;;  %v3739_v52 = vpop.f32.mrb[117].mxu0  ;;  %v3635_v53 = vpop.f32.mrb[122].mxu1 }
 0x2a9   : > { %v3740_v51 = vadd.f32 %v3739_v52, %v3738_v23  ;;  %v3741_v45 = vpop.f32.mrb[118].mxu0  ;;  %v3636_v59 = vpop.f32.mrb[123].mxu1 }
 0x2aa   : > { %v2405_v14 = vadd.f32 %v3634_v10, %v4804_v13  ;;  %v3637_v61 = vadd.f32 %v3636_v59, %v3635_v53  ;;  %v3742_v2 = vpop.f32.mrb[119].mxu0 }
 0x2ab   : > { %v3743_v3 = vadd.f32 %v3742_v2, %v3741_v45  ;;  %v4902_v35 = vadd.f32 %v3740_v51, %v2397_v36 }
 0x2ac   : > { %v2408_v55 = vadd.f32 %v3637_v61, %v4807_v31 }
 0x2ad   : > { %v4905_v19 = vadd.f32 %v3743_v3, %v2400_v47 }
 0x2ae   : > { %v3638_v11 = vpop.f32.mrb[124].mxu1 }
 0x2af   : > { %v3744_v22 = vpop.f32.mrb[120].mxu0  ;;  %v3639_v57 = vpop.f32.mrb[125].mxu1 }
 0x2b0   : > { %v3640_v32 = vadd.f32 %v3639_v57, %v3638_v11  ;;  %v3745_v20 = vpop.f32.mrb[121].mxu0  ;;  %v3641_v48 = vpop.f32.mrb[126].mxu1 }
 0x2b1   : > { %v3746_v46 = vadd.f32 %v3745_v20, %v3744_v22  ;;  %v3747_v24 = vpop.f32.mrb[122].mxu0  ;;  %v3642_v33 = vpop.f32.mrb[127].mxu1 }
 0x2b2   : > { %v2413_v13 = vadd.f32 %v3640_v32, %v4811_v27  ;;  %v3643_v56 = vadd.f32 %v3642_v33, %v3641_v48  ;;  %v3748_v62 = vpop.f32.mrb[123].mxu0 }
 0x2b3   : > { %v3749_v49 = vadd.f32 %v3748_v62, %v3747_v24  ;;  %v4908_v12 = vadd.f32 %v3746_v46, %v2405_v14 }
 0x2b4   : > { %v2416_v31 = vadd.f32 %v3643_v56, %v4813_v60 }
 0x2b5   : > { %v4911_v36 = vadd.f32 %v3749_v49, %v2408_v55 }
 0x2b6   : > { %v3644_v17 = vpop.f32.mrb[128].mxu1 }
 0x2b7   : > { %v3750_v28 = vpop.f32.mrb[124].mxu0  ;;  %v3645_v21 = vpop.f32.mrb[129].mxu1 }
 0x2b8   : > { %v3646_v47 = vadd.f32 %v3645_v21, %v3644_v17  ;;  %v3751_v25 = vpop.f32.mrb[125].mxu0  ;;  %v3647_v23 = vpop.f32.mrb[130].mxu1 }
 0x2b9   : > { %v3752_v29 = vadd.f32 %v3751_v25, %v3750_v28  ;;  %v3753_v10 = vpop.f32.mrb[126].mxu0  ;;  %v3648_v52 = vpop.f32.mrb[131].mxu1 }
 0x2ba   : > { %v2421_v27 = vadd.f32 %v3646_v47, %v4820_v18  ;;  %v3649_v53 = vadd.f32 %v3648_v52, %v3647_v23  ;;  %v3754_v51 = vpop.f32.mrb[127].mxu0 }
 0x2bb   : > { %v3755_v45 = vadd.f32 %v3754_v51, %v3753_v10  ;;  %v4914_v59 = vadd.f32 %v3752_v29, %v2413_v13 }
 0x2bc   : > { %v2424_v60 = vadd.f32 %v3649_v53, %v4822_v40 }
 0x2bd   : > { %v4917_v14 = vadd.f32 %v3755_v45, %v2416_v31 }
 0x2be   : > { %v3650_v61 = vpop.f32.mrb[132].mxu1 }
 0x2bf   : > { %v3756_v2 = vpop.f32.mrb[128].mxu0  ;;  %v3651_v3 = vpop.f32.mrb[133].mxu1 }
 0x2c0   : > { %v3652_v55 = vadd.f32 %v3651_v3, %v3650_v61  ;;  %v3757_v11 = vpop.f32.mrb[129].mxu0  ;;  %v3653_v22 = vpop.f32.mrb[134].mxu1 }
 0x2c1   : > { %v3758_v57 = vadd.f32 %v3757_v11, %v3756_v2  ;;  %v3759_v32 = vpop.f32.mrb[130].mxu0  ;;  %v3654_v20 = vpop.f32.mrb[135].mxu1 }
 0x2c2   : > { %v2429_v18 = vadd.f32 %v3652_v55, %v4826_v30  ;;  %v3655_v48 = vadd.f32 %v3654_v20, %v3653_v22  ;;  %v3760_v46 = vpop.f32.mrb[131].mxu0 }
 0x2c3   : > { %v3761_v24 = vadd.f32 %v3760_v46, %v3759_v32  ;;  %v4920_v33 = vadd.f32 %v3758_v57, %v2421_v27 }
 0x2c4   : > { %v2432_v40 = vadd.f32 %v3655_v48, %v4828_v38 }
 0x2c5   : > { %v4923_v13 = vadd.f32 %v3761_v24, %v2424_v60 }
 0x2c6   : > { %v3656_v56 = vpop.f32.mrb[136].mxu1 }
 0x2c7   : > { %v3762_v62 = vpop.f32.mrb[132].mxu0  ;;  %v3657_v49 = vpop.f32.mrb[137].mxu1 }
 0x2c8   : > { %v3658_v31 = vadd.f32 %v3657_v49, %v3656_v56  ;;  %v3763_v17 = vpop.f32.mrb[133].mxu0  ;;  %v3659_v28 = vpop.f32.mrb[138].mxu1 }
 0x2c9   : > { %v3764_v21 = vadd.f32 %v3763_v17, %v3762_v62  ;;  %v3765_v47 = vpop.f32.mrb[134].mxu0  ;;  %v3660_v25 = vpop.f32.mrb[139].mxu1 }
 0x2ca   : > { %v2437_v30 = vadd.f32 %v3658_v31, %v4835_v6  ;;  %v3661_v23 = vadd.f32 %v3660_v25, %v3659_v28  ;;  %v3766_v29 = vpop.f32.mrb[135].mxu0 }
 0x2cb   : > { %v3767_v10 = vadd.f32 %v3766_v29, %v3765_v47  ;;  %v4926_v52 = vadd.f32 %v3764_v21, %v2429_v18 }
 0x2cc   : > { %v2440_v38 = vadd.f32 %v3661_v23, %v4837_v0 }
 0x2cd   : > { %v4929_v27 = vadd.f32 %v3767_v10, %v2432_v40 }
 0x2ce   : > { %v3662_v53 = vpop.f32.mrb[140].mxu1 }
 0x2cf   : > { %v3768_v51 = vpop.f32.mrb[136].mxu0  ;;  %v3663_v45 = vpop.f32.mrb[141].mxu1 }
 0x2d0   : > { %v3664_v60 = vadd.f32 %v3663_v45, %v3662_v53  ;;  %v3769_v61 = vpop.f32.mrb[137].mxu0  ;;  %v3665_v2 = vpop.f32.mrb[142].mxu1 }
 0x2d1   : > { %v3770_v3 = vadd.f32 %v3769_v61, %v3768_v51  ;;  %v3771_v55 = vpop.f32.mrb[138].mxu0  ;;  %v3666_v11 = vpop.f32.mrb[143].mxu1 }
 0x2d2   : > { %v2445_v6 = vadd.f32 %v3664_v60, %v4842_v41  ;;  %v3667_v22 = vadd.f32 %v3666_v11, %v3665_v2  ;;  %v3772_v57 = vpop.f32.mrb[139].mxu0 }
 0x2d3   : > { %v3773_v32 = vadd.f32 %v3772_v57, %v3771_v55  ;;  %v4932_v20 = vadd.f32 %v3770_v3, %v2437_v30 }
 0x2d4   : > { %v2448_v0 = vadd.f32 %v3667_v22, %v4845_v37 }
 0x2d5   : > { %v4935_v18 = vadd.f32 %v3773_v32, %v2440_v38 }
 0x2d6   : > { %v3894_v48 = vpop.f32.mrb[144].mxu1 }
 0x2d7   : > { %v3774_v46 = vpop.f32.mrb[140].mxu0  ;;  %v2655_v24 = vadd.f32 %v3894_v48, %v4854_v34  ;;  %v2646_v40 = vpop.f32.mrb[145].mxu1 }
 0x2d8   : > { %v3775_v56 = vpop.f32.mrb[141].mxu0  ;;  %v2647_v62 = vadd.f32 %v2646_v40, %v4848_v15  ;;  %v3895_v49 = vpop.f32.mrb[146].mxu1 }
 0x2d9   : > { %v3776_v31 = vadd.f32 %v3775_v56, %v3774_v46  ;;  %v3777_v41 = vpop.f32.mrb[142].mxu0  ;;  %v2658_v17 = vadd.f32 %v3895_v49, %v4857_v44  ;;  %v2649_v28 = vpop.f32.mrb[147].mxu1  ;;  %v2775_v37 = vmax.f32 %v2655_v24, 0.0 }
 0x2da   : > { %v3778_v21 = vpop.f32.mrb[143].mxu0  ;;  %v2650_v47 = vadd.f32 %v2649_v28, %v4851_v54  ;;  %v2773_v29 = vmax.f32 %v2647_v62, 0.0 }
 0x2db   : > { %v2776_v25 = vmax.f32 %v2658_v17, 0.0  ;;  %v3779_v30 = vadd.f32 %v3778_v21, %v3777_v41  ;;  %v4941_v23 = vadd.f32 %v3776_v31, %v2445_v6 }
 0x2dc   : > { %v2774_v34 = vmax.f32 %v2650_v47, 0.0 }
 0x2dd   : > { %v2806_v10 = vpack.c.bf16 %v2776_v25, %v2775_v37  ;;  %v4943_v38 = vadd.f32 %v3779_v30, %v2448_v0 }
 0x2de   : > { %v2805_v15 = vpack.c.bf16 %v2774_v34, %v2773_v29  ;;  %v3898_v53 = vpop.f32.mrb[148].mxu1 }
 0x2df   : > { %v2671_v51 = vadd.f32 %v3898_v53, %v4866_v63  ;;  %v2662_v45 = vpop.f32.mrb[149].mxu1 }
 0x2e0   : > { %v2663_v44 = vadd.f32 %v2662_v45, %v4860_v50  ;;  %v3899_v60 = vpop.f32.mrb[150].mxu1  ;;  %3940 = vmatprep.mubr.bf16.mxu0 %v2805_v15 }
 0x2e1   : > { %v2674_v54 = vadd.f32 %v3899_v60, %v4869_v16  ;;  %v2665_v61 = vpop.f32.mrb[151].mxu1  ;;  %3941 = vmatmul.mubr.bf16.vlgmr.msra.gmra.mrb[144].mxu0 %v2806_v10  ;;  %v2779_v3 = vmax.f32 %v2671_v51, 0.0 }
 0x2e2   : > { %v2666_v2 = vadd.f32 %v2665_v61, %v4863_v5  ;;  %v2777_v11 = vmax.f32 %v2663_v44, 0.0 }
 0x2e3   : > { %v2780_v55 = vmax.f32 %v2674_v54, 0.0 }
 0x2e4   : > { %v2778_v6 = vmax.f32 %v2666_v2, 0.0 }
 0x2e5   : > { %v2808_v22 = vpack.c.bf16 %v2780_v55, %v2779_v3 }
 0x2e6   : > { %v2807_v57 = vpack.c.bf16 %v2778_v6, %v2777_v11  ;;  %v3902_v32 = vpop.f32.mrb[152].mxu1 }
 0x2e7   : > { %v2687_v63 = vadd.f32 %v3902_v32, %v4878_v9  ;;  %v2678_v0 = vpop.f32.mrb[153].mxu1 }
 0x2e8   : > { %v2679_v50 = vadd.f32 %v2678_v0, %v4872_v26  ;;  %v3903_v48 = vpop.f32.mrb[154].mxu1  ;;  %3944 = vmatprep.mubr.bf16.mxu0 %v2807_v57 }
 0x2e9   : > { %v2690_v16 = vadd.f32 %v3903_v48, %v4881_v39  ;;  %v2681_v46 = vpop.f32.mrb[155].mxu1  ;;  %3945 = vmatmul.mubr.bf16.gmra.mrb[148].mxu0 %v2808_v22  ;;  %v2783_v24 = vmax.f32 %v2687_v63, 0.0 }
 0x2ea   : > { %v2682_v5 = vadd.f32 %v2681_v46, %v4875_v1  ;;  %v2781_v56 = vmax.f32 %v2679_v50, 0.0 }
 0x2eb   : > { %v2784_v40 = vmax.f32 %v2690_v16, 0.0 }
 0x2ec   : > { %v2782_v62 = vmax.f32 %v2682_v5, 0.0 }
 0x2ed   : > { %v2810_v49 = vpack.c.bf16 %v2784_v40, %v2783_v24 }
 0x2ee   : > { %v2809_v31 = vpack.c.bf16 %v2782_v62, %v2781_v56  ;;  %v3906_v41 = vpop.f32.mrb[156].mxu1 }
 0x2ef   : > { %v2703_v9 = vadd.f32 %v3906_v41, %v4890_v8  ;;  %v2694_v17 = vpop.f32.mrb[157].mxu1 }
 0x2f0   : > { %v2695_v26 = vadd.f32 %v2694_v17, %v4884_v43  ;;  %v3907_v28 = vpop.f32.mrb[158].mxu1  ;;  %3948 = vmatprep.mubr.bf16.mxu0 %v2809_v31 }
 0x2f1   : > { %v2706_v39 = vadd.f32 %v3907_v28, %v4893_v7  ;;  %v2697_v21 = vpop.f32.mrb[159].mxu1  ;;  %3949 = vmatmul.mubr.bf16.gmra.mrb[152].mxu0 %v2810_v49  ;;  %v2787_v47 = vmax.f32 %v2703_v9, 0.0 }
 0x2f2   : > { %v2698_v1 = vadd.f32 %v2697_v21, %v4887_v42  ;;  %v2785_v25 = vmax.f32 %v2695_v26, 0.0 }
 0x2f3   : > { %v2788_v37 = vmax.f32 %v2706_v39, 0.0 }
 0x2f4   : > { %v2786_v30 = vmax.f32 %v2698_v1, 0.0 }
 0x2f5   : > { %v2812_v29 = vpack.c.bf16 %v2788_v37, %v2787_v47 }
 0x2f6   : > { %v2811_v34 = vpack.c.bf16 %v2786_v30, %v2785_v25  ;;  %v3910_v10 = vpop.f32.mrb[160].mxu1 }
 0x2f7   : > { %v2719_v8 = vadd.f32 %v3910_v10, %v4902_v35  ;;  %v2710_v15 = vpop.f32.mrb[161].mxu1 }
 0x2f8   : > { %v2711_v43 = vadd.f32 %v2710_v15, %v4896_v4  ;;  %v3911_v53 = vpop.f32.mrb[162].mxu1  ;;  %3952 = vmatprep.mubr.bf16.mxu0 %v2811_v34  ;;  %v4087_v15 = vld [vmem:[%s4193_s12] sm:$0xff] }
 0x2f9   : > { %v2722_v7 = vadd.f32 %v3911_v53, %v4905_v19  ;;  %v2713_v51 = vpop.f32.mrb[163].mxu1  ;;  %3953 = vmatmul.mubr.bf16.gmra.mrb[156].mxu0 %v2812_v29  ;;  %v2791_v45 = vmax.f32 %v2719_v8, 0.0  ;;  %v4086_v29 = vld [vmem:[%s4193_s12 + $0x10] sm:$0xff] }
 0x2fa   : > { %v2714_v42 = vadd.f32 %v2713_v51, %v4899_v58  ;;  %v2789_v60 = vmax.f32 %v2711_v43, 0.0  ;;  %v4088_v51 = vld [vmem:[%s4193_s12 + $0x18] sm:$0xff] }
 0x2fb   : > { %v2792_v44 = vmax.f32 %v2722_v7, 0.0 }
 0x2fc   : > { %v2790_v54 = vmax.f32 %v2714_v42, 0.0 }
 0x2fd   : > { %v2814_v61 = vpack.c.bf16 %v2792_v44, %v2791_v45  ;;  %v4089_v44 = vld [vmem:[%s4193_s12 + $0x8] sm:$0xff] }
 0x2fe   : > { %v2813_v2 = vpack.c.bf16 %v2790_v54, %v2789_v60  ;;  %v3914_v3 = vpop.f32.mrb[164].mxu1 }
 0x2ff   : > { %v2735_v35 = vadd.f32 %v3914_v3, %v4914_v59  ;;  %v2726_v55 = vpop.f32.mrb[165].mxu1 }
 0x300   : > { %v2727_v4 = vadd.f32 %v2726_v55, %v4908_v12  ;;  %v3915_v11 = vpop.f32.mrb[166].mxu1  ;;  %3956 = vmatprep.mubr.bf16.mxu0 %v2813_v2 }
 0x301   : > { %v2738_v19 = vadd.f32 %v3915_v11, %v4917_v14  ;;  %v2729_v6 = vpop.f32.mrb[167].mxu1  ;;  %3957 = vmatmul.mubr.bf16.gmra.mrb[160].mxu0 %v2814_v61  ;;  %v2795_v22 = vmax.f32 %v2735_v35, 0.0  ;;  %v4090_v11 = vld [vmem:[%s4193_s12 + $0x30] sm:$0xff] }
 0x302   : > { %v2730_v58 = vadd.f32 %v2729_v6, %v4911_v36  ;;  %v2793_v32 = vmax.f32 %v2727_v4, 0.0 }
 0x303   : > { %v2796_v57 = vmax.f32 %v2738_v19, 0.0 }
 0x304   : > { %v2794_v63 = vmax.f32 %v2730_v58, 0.0 }
 0x305   : > { %v2816_v0 = vpack.c.bf16 %v2796_v57, %v2795_v22  ;;  %v4091_v22 = vld [vmem:[%s4193_s12 + $0x20] sm:$0xff] }
 0x306   : > { %v2815_v50 = vpack.c.bf16 %v2794_v63, %v2793_v32  ;;  %v3918_v48 = vpop.f32.mrb[168].mxu1 }
 0x307   : > { %v2751_v59 = vadd.f32 %v3918_v48, %v4926_v52  ;;  %v2742_v16 = vpop.f32.mrb[169].mxu1 }
 0x308   : > { %v2743_v12 = vadd.f32 %v2742_v16, %v4920_v33  ;;  %v3919_v46 = vpop.f32.mrb[170].mxu1  ;;  %3960 = vmatprep.mubr.bf16.mxu0 %v2815_v50 }
 0x309   : > { %v2754_v14 = vadd.f32 %v3919_v46, %v4929_v27  ;;  %v2745_v5 = vpop.f32.mrb[171].mxu1  ;;  %3961 = vmatmul.mubr.bf16.gmra.mrb[164].mxu0 %v2816_v0  ;;  %v2799_v24 = vmax.f32 %v2751_v59, 0.0  ;;  %v4092_v0 = vld [vmem:[%s4193_s12 + $0x38] sm:$0xff]  ;;  %v4093_v59 = vld [vmem:[%s4193_s12 + $0x28] sm:$0xff] }
 0x30a   : > { %v2746_v36 = vadd.f32 %v2745_v5, %v4923_v13  ;;  %v2797_v56 = vmax.f32 %v2743_v12, 0.0 }
 0x30b   : > { %v2800_v40 = vmax.f32 %v2754_v14, 0.0 }
 0x30c   : > { %v2798_v62 = vmax.f32 %v2746_v36, 0.0 }
 0x30d   : > { %v2818_v49 = vpack.c.bf16 %v2800_v40, %v2799_v24 }
 0x30e   : > { %v2817_v31 = vpack.c.bf16 %v2798_v62, %v2797_v56  ;;  %v3922_v41 = vpop.f32.mrb[172].mxu1  ;;  %v4094_v56 = vld [vmem:[%s4193_s12 + $0x50] sm:$0xff] }
 0x30f   : > { %v2767_v52 = vadd.f32 %v3922_v41, %v4941_v23  ;;  %v2758_v9 = vpop.f32.mrb[173].mxu1  ;;  %v4095_v41 = vld [vmem:[%s4193_s12 + $0x40] sm:$0xff] }
 0x310   : > { %v2759_v33 = vadd.f32 %v2758_v9, %v4932_v20  ;;  %v3923_v17 = vpop.f32.mrb[174].mxu1  ;;  %3964 = vmatprep.mubr.bf16.mxu0 %v2817_v31  ;;  %v4976_v20 = vld [vmem:[%s5090_s6] ss:$0 sm:$0xff] }
 0x311   : > { %v2770_v27 = vadd.f32 %v3923_v17, %v4943_v38  ;;  %v2761_v26 = vpop.f32.mrb[175].mxu1  ;;  %3965 = vmatmul.mubr.bf16.gmra.mrb[168].mxu0 %v2818_v49  ;;  %v2803_v28 = vmax.f32 %v2767_v52, 0.0  ;;  %v4096_v17 = vld [vmem:[%s4193_s12 + $0x58] sm:$0xff] }
 0x312   : > { %v2762_v13 = vadd.f32 %v2761_v26, %v4935_v18  ;;  %v2801_v21 = vmax.f32 %v2759_v33, 0.0 }
 0x313   : > { %v2804_v39 = vmax.f32 %v2770_v27, 0.0 }
 0x314   : > { %v2802_v1 = vmax.f32 %v2762_v13, 0.0  ;;  %v4097_v13 = vld [vmem:[%s4193_s12 + $0x48] sm:$0xff] }
 0x315   : > { %v2820_v47 = vpack.c.bf16 %v2804_v39, %v2803_v28 }
 0x316   : > { %v2819_v23 = vpack.c.bf16 %v2802_v1, %v2801_v21 }
 0x318   : > { %3968 = vmatprep.mubr.bf16.mxu0 %v2819_v23 }
 0x319   : > { %3969 = vmatmul.mubr.bf16.gmra.mrb[172].mxu0 %v2820_v47 }
 0x3b4   : > { %v3942_v38 = vpop.f32.mrb[144].mxu0 }
 0x3b5   : > { %v2935_v37 = vadd.f32 %v3942_v38, %v4976_v20  ;;  %v2926_v18 = vpop.f32.mrb[145].mxu0 }
 0x3b6   : > { %v2927_v25 = vadd.f32 %v4976_v20, %v2926_v18  ;;  %v3943_v30 = vpop.f32.mrb[146].mxu0  ;;  %v4098_v18 = vld [vmem:[%s4193_s12 + $0x70] sm:$0xff] }
 0x3b7   : > { %v3055_v34 = vadd.f32 %v4086_v29, %v2935_v37  ;;  %v2938_v10 = vadd.f32 %v3943_v30, %v4976_v20  ;;  %v2929_v8 = vpop.f32.mrb[147].mxu0 }
 0x3b8   : > { %v3053_v43 = vadd.f32 %v4087_v15, %v2927_v25  ;;  %v2930_v53 = vadd.f32 %v4976_v20, %v2929_v8 }
 0x3b9   : > { %v3087_v7 = vmax.f32 %v3055_v34, 0.0  ;;  %v3056_v42 = vadd.f32 %v4088_v51, %v2938_v10  ;;  %v4099_v34 = vld [vmem:[%s4193_s12 + $0x60] sm:$0xff]  ;;  %v4101_v51 = vld [vmem:[%s4193_s12 + $0x68] sm:$0xff] }
 0x3ba   : > { %v3085_v45 = vmax.f32 %v3053_v43, 0.0  ;;  %v3054_v60 = vadd.f32 %v4089_v44, %v2930_v53  ;;  %v4100_v43 = vld [vmem:[%s4193_s12 + $0x78] sm:$0xff] }
 0x3bb   : > { %3119 = vst [vmem:[%s4987_s20 + $0x10] sm:$0xff] %v3087_v7  ;;  %v3088_v54 = vmax.f32 %v3056_v42, 0.0 }
 0x3bc   : > { %3117 = vst [vmem:[%s4987_s20] sm:$0xff] %v3085_v45  ;;  %v3086_v61 = vmax.f32 %v3054_v60, 0.0  ;;  %v3946_v2 = vpop.f32.mrb[148].mxu0 }
 0x3bd   : > { %3120 = vst [vmem:[%s4987_s20 + $0x18] sm:$0xff] %v3088_v54  ;;  %v2951_v3 = vadd.f32 %v3946_v2, %v4976_v20  ;;  %v2942_v35 = vpop.f32.mrb[149].mxu0 }
 0x3be   : > { %3118 = vst [vmem:[%s4987_s20 + $0x8] sm:$0xff] %v3086_v61  ;;  %v2943_v55 = vadd.f32 %v4976_v20, %v2942_v35  ;;  %v3947_v4 = vpop.f32.mrb[150].mxu0  ;;  %v4102_v35 = vld [vmem:[%s4193_s12 + $0x90] sm:$0xff] }
 0x3bf   : > { %v3059_v19 = vadd.f32 %v4090_v11, %v2951_v3  ;;  %v2954_v6 = vadd.f32 %v3947_v4, %v4976_v20  ;;  %v2945_v58 = vpop.f32.mrb[151].mxu0 }
 0x3c0   : > { %v3057_v57 = vadd.f32 %v4091_v22, %v2943_v55  ;;  %v2946_v32 = vadd.f32 %v4976_v20, %v2945_v58 }
 0x3c1   : > { %v3091_v63 = vmax.f32 %v3059_v19, 0.0  ;;  %v3060_v50 = vadd.f32 %v4092_v0, %v2954_v6  ;;  %v4103_v19 = vld [vmem:[%s4193_s12 + $0x80] sm:$0xff]  ;;  %v4105_v0 = vld [vmem:[%s4193_s12 + $0x88] sm:$0xff] }
 0x3c2   : > { %v3089_v48 = vmax.f32 %v3057_v57, 0.0  ;;  %v3058_v16 = vadd.f32 %v4093_v59, %v2946_v32  ;;  %v4104_v57 = vld [vmem:[%s4193_s12 + $0x98] sm:$0xff] }
 0x3c3   : > { %3123 = vst [vmem:[%s4987_s20 + $0x30] sm:$0xff] %v3091_v63  ;;  %v3092_v12 = vmax.f32 %v3060_v50, 0.0 }
 0x3c4   : > { %3121 = vst [vmem:[%s4987_s20 + $0x20] sm:$0xff] %v3089_v48  ;;  %v3090_v46 = vmax.f32 %v3058_v16, 0.0  ;;  %v3950_v14 = vpop.f32.mrb[152].mxu0 }
 0x3c5   : > { %3124 = vst [vmem:[%s4987_s20 + $0x38] sm:$0xff] %v3092_v12  ;;  %v2967_v5 = vadd.f32 %v3950_v14, %v4976_v20  ;;  %v2958_v36 = vpop.f32.mrb[153].mxu0 }
 0x3c6   : > { %3122 = vst [vmem:[%s4987_s20 + $0x28] sm:$0xff] %v3090_v46  ;;  %v2959_v24 = vadd.f32 %v4976_v20, %v2958_v36  ;;  %v3951_v40 = vpop.f32.mrb[154].mxu0  ;;  %v4106_v36 = vld [vmem:[%s4193_s12 + $0xb0] sm:$0xff] }
 0x3c7   : > { %v3063_v62 = vadd.f32 %v4094_v56, %v2967_v5  ;;  %v2970_v49 = vadd.f32 %v3951_v40, %v4976_v20  ;;  %v2961_v31 = vpop.f32.mrb[155].mxu0 }
 0x3c8   : > { %v3061_v52 = vadd.f32 %v4095_v41, %v2959_v24  ;;  %v2962_v9 = vadd.f32 %v4976_v20, %v2961_v31 }
 0x3c9   : > { %v3095_v33 = vmax.f32 %v3063_v62, 0.0  ;;  %v3064_v27 = vadd.f32 %v4096_v17, %v2970_v49  ;;  %v4107_v62 = vld [vmem:[%s4193_s12 + $0xa0] sm:$0xff]  ;;  %v4109_v17 = vld [vmem:[%s4193_s12 + $0xa8] sm:$0xff] }
 0x3ca   : > { %v3093_v26 = vmax.f32 %v3061_v52, 0.0  ;;  %v3062_v28 = vadd.f32 %v4097_v13, %v2962_v9  ;;  %v4108_v52 = vld [vmem:[%s4193_s12 + $0xb8] sm:$0xff] }
 0x3cb   : > { %3127 = vst [vmem:[%s4987_s20 + $0x50] sm:$0xff] %v3095_v33  ;;  %v3096_v39 = vmax.f32 %v3064_v27, 0.0 }
 0x3cc   : > { %3125 = vst [vmem:[%s4987_s20 + $0x40] sm:$0xff] %v3093_v26  ;;  %v3094_v21 = vmax.f32 %v3062_v28, 0.0  ;;  %v3954_v1 = vpop.f32.mrb[156].mxu0 }
 0x3cd   : > { %3128 = vst [vmem:[%s4987_s20 + $0x58] sm:$0xff] %v3096_v39  ;;  %v2983_v47 = vadd.f32 %v3954_v1, %v4976_v20  ;;  %v2974_v23 = vpop.f32.mrb[157].mxu0 }
 0x3ce   : > { %3126 = vst [vmem:[%s4987_s20 + $0x48] sm:$0xff] %v3094_v21  ;;  %v2975_v38 = vadd.f32 %v4976_v20, %v2974_v23  ;;  %v3955_v37 = vpop.f32.mrb[158].mxu0  ;;  %v4110_v23 = vld [vmem:[%s4193_s12 + $0xd0] sm:$0xff] }
 0x3cf   : > { %v3067_v25 = vadd.f32 %v4098_v18, %v2983_v47  ;;  %v2986_v30 = vadd.f32 %v3955_v37, %v4976_v20  ;;  %v2977_v29 = vpop.f32.mrb[159].mxu0 }
 0x3d0   : > { %v3065_v10 = vadd.f32 %v4099_v34, %v2975_v38  ;;  %v2978_v8 = vadd.f32 %v4976_v20, %v2977_v29 }
 0x3d1   : > { %v3099_v15 = vmax.f32 %v3067_v25, 0.0  ;;  %v3068_v53 = vadd.f32 %v4100_v43, %v2986_v30  ;;  %v4111_v25 = vld [vmem:[%s4193_s12 + $0xc0] sm:$0xff]  ;;  %v4113_v43 = vld [vmem:[%s4193_s12 + $0xc8] sm:$0xff] }
 0x3d2   : > { %v3097_v7 = vmax.f32 %v3065_v10, 0.0  ;;  %v3066_v42 = vadd.f32 %v4101_v51, %v2978_v8  ;;  %v4112_v10 = vld [vmem:[%s4193_s12 + $0xd8] sm:$0xff] }
 0x3d3   : > { %3131 = vst [vmem:[%s4987_s20 + $0x70] sm:$0xff] %v3099_v15  ;;  %v3100_v45 = vmax.f32 %v3068_v53, 0.0 }
 0x3d4   : > { %3129 = vst [vmem:[%s4987_s20 + $0x60] sm:$0xff] %v3097_v7  ;;  %v3098_v44 = vmax.f32 %v3066_v42, 0.0  ;;  %v3958_v60 = vpop.f32.mrb[160].mxu0 }
 0x3d5   : > { %3132 = vst [vmem:[%s4987_s20 + $0x78] sm:$0xff] %v3100_v45  ;;  %v2999_v54 = vadd.f32 %v3958_v60, %v4976_v20  ;;  %v2990_v61 = vpop.f32.mrb[161].mxu0 }
 0x3d6   : > { %3130 = vst [vmem:[%s4987_s20 + $0x68] sm:$0xff] %v3098_v44  ;;  %v2991_v2 = vadd.f32 %v4976_v20, %v2990_v61  ;;  %v3959_v3 = vpop.f32.mrb[162].mxu0  ;;  %v4114_v61 = vld [vmem:[%s4193_s12 + $0xf0] sm:$0xff] }
 0x3d7   : > { %v3071_v55 = vadd.f32 %v4102_v35, %v2999_v54  ;;  %v3002_v4 = vadd.f32 %v3959_v3, %v4976_v20  ;;  %v2993_v11 = vpop.f32.mrb[163].mxu0 }
 0x3d8   : > { %v3069_v6 = vadd.f32 %v4103_v19, %v2991_v2  ;;  %v2994_v58 = vadd.f32 %v4976_v20, %v2993_v11 }
 0x3d9   : > { %v3103_v22 = vmax.f32 %v3071_v55, 0.0  ;;  %v3072_v32 = vadd.f32 %v4104_v57, %v3002_v4  ;;  %v4115_v55 = vld [vmem:[%s4193_s12 + $0xe0] sm:$0xff]  ;;  %v4117_v57 = vld [vmem:[%s4193_s12 + $0xe8] sm:$0xff] }
 0x3da   : > { %v3101_v63 = vmax.f32 %v3069_v6, 0.0  ;;  %v3070_v50 = vadd.f32 %v4105_v0, %v2994_v58  ;;  %v4116_v6 = vld [vmem:[%s4193_s12 + $0xf8] sm:$0xff] }
 0x3db   : > { %3135 = vst [vmem:[%s4987_s20 + $0x90] sm:$0xff] %v3103_v22  ;;  %v3104_v48 = vmax.f32 %v3072_v32, 0.0 }
 0x3dc   : > { %3133 = vst [vmem:[%s4987_s20 + $0x80] sm:$0xff] %v3101_v63  ;;  %v3102_v59 = vmax.f32 %v3070_v50, 0.0  ;;  %v3962_v16 = vpop.f32.mrb[164].mxu0 }
 0x3dd   : > { %3136 = vst [vmem:[%s4987_s20 + $0x98] sm:$0xff] %v3104_v48  ;;  %v3015_v12 = vadd.f32 %v3962_v16, %v4976_v20  ;;  %v3006_v46 = vpop.f32.mrb[165].mxu0 }
 0x3de   : > { %3134 = vst [vmem:[%s4987_s20 + $0x88] sm:$0xff] %v3102_v59  ;;  %v3007_v14 = vadd.f32 %v4976_v20, %v3006_v46  ;;  %v3963_v5 = vpop.f32.mrb[166].mxu0 }
 0x3df   : > { %v3075_v24 = vadd.f32 %v4106_v36, %v3015_v12  ;;  %v3018_v40 = vadd.f32 %v3963_v5, %v4976_v20  ;;  %v3009_v56 = vpop.f32.mrb[167].mxu0 }
 0x3e0   : > { %v3073_v49 = vadd.f32 %v4107_v62, %v3007_v14  ;;  %v3010_v31 = vadd.f32 %v4976_v20, %v3009_v56 }
 0x3e1   : > { %v3107_v41 = vmax.f32 %v3075_v24, 0.0  ;;  %v3076_v9 = vadd.f32 %v4108_v52, %v3018_v40 }
 0x3e2   : > { %v3105_v33 = vmax.f32 %v3073_v49, 0.0  ;;  %v3074_v27 = vadd.f32 %v4109_v17, %v3010_v31 }
 0x3e3   : > { %3139 = vst [vmem:[%s4987_s20 + $0xb0] sm:$0xff] %v3107_v41  ;;  %v3108_v26 = vmax.f32 %v3076_v9, 0.0 }
 0x3e4   : > { %3137 = vst [vmem:[%s4987_s20 + $0xa0] sm:$0xff] %v3105_v33  ;;  %v3106_v13 = vmax.f32 %v3074_v27, 0.0  ;;  %v3966_v28 = vpop.f32.mrb[168].mxu0 }
 0x3e5   : > { %3140 = vst [vmem:[%s4987_s20 + $0xb8] sm:$0xff] %v3108_v26  ;;  %v3031_v39 = vadd.f32 %v3966_v28, %v4976_v20  ;;  %v3022_v21 = vpop.f32.mrb[169].mxu0 }
 0x3e6   : > { %3138 = vst [vmem:[%s4987_s20 + $0xa8] sm:$0xff] %v3106_v13  ;;  %v3023_v1 = vadd.f32 %v4976_v20, %v3022_v21  ;;  %v3967_v47 = vpop.f32.mrb[170].mxu0 }
 0x3e7   : > { %v3079_v38 = vadd.f32 %v4110_v23, %v3031_v39  ;;  %v3034_v37 = vadd.f32 %v3967_v47, %v4976_v20  ;;  %v3025_v18 = vpop.f32.mrb[171].mxu0 }
 0x3e8   : > { %v3077_v30 = vadd.f32 %v4111_v25, %v3023_v1  ;;  %v3026_v29 = vadd.f32 %v4976_v20, %v3025_v18 }
 0x3e9   : > { %v3111_v34 = vmax.f32 %v3079_v38, 0.0  ;;  %v3080_v8 = vadd.f32 %v4112_v10, %v3034_v37 }
 0x3ea   : > { %v3109_v15 = vmax.f32 %v3077_v30, 0.0  ;;  %v3078_v53 = vadd.f32 %v4113_v43, %v3026_v29 }
 0x3eb   : > { %3143 = vst [vmem:[%s4987_s20 + $0xd0] sm:$0xff] %v3111_v34  ;;  %v3112_v7 = vmax.f32 %v3080_v8, 0.0 }
 0x3ec   : > { %3141 = vst [vmem:[%s4987_s20 + $0xc0] sm:$0xff] %v3109_v15  ;;  %v3110_v51 = vmax.f32 %v3078_v53, 0.0  ;;  %v3970_v42 = vpop.f32.mrb[172].mxu0 }
 0x3ed   : > { %3144 = vst [vmem:[%s4987_s20 + $0xd8] sm:$0xff] %v3112_v7  ;;  %v3047_v45 = vadd.f32 %v3970_v42, %v4976_v20  ;;  %v3038_v44 = vpop.f32.mrb[173].mxu0 }
 0x3ee   : > { %3142 = vst [vmem:[%s4987_s20 + $0xc8] sm:$0xff] %v3110_v51  ;;  %v3039_v60 = vadd.f32 %v4976_v20, %v3038_v44  ;;  %v3971_v54 = vpop.f32.mrb[174].mxu0 }
 0x3ef   : > { %v3083_v2 = vadd.f32 %v4114_v61, %v3047_v45  ;;  %v3050_v3 = vadd.f32 %v3971_v54, %v4976_v20  ;;  %v3041_v35 = vpop.f32.mrb[175].mxu0 }
 0x3f0   : > { %v3081_v4 = vadd.f32 %v4115_v55, %v3039_v60  ;;  %v3042_v11 = vadd.f32 %v4976_v20, %v3041_v35 }
 0x3f1   : > { %v3115_v19 = vmax.f32 %v3083_v2, 0.0  ;;  %v3084_v58 = vadd.f32 %v4116_v6, %v3050_v3 }
 0x3f2   : > { %v3113_v22 = vmax.f32 %v3081_v4, 0.0  ;;  %v3082_v32 = vadd.f32 %v4117_v57, %v3042_v11 }
 0x3f3   : > { %3147 = vst [vmem:[%s4987_s20 + $0xf0] sm:$0xff] %v3115_v19  ;;  %v3116_v63 = vmax.f32 %v3084_v58, 0.0 }
 0x3f4   : > { %3145 = vst [vmem:[%s4987_s20 + $0xe0] sm:$0xff] %v3113_v22  ;;  %v3114_v0 = vmax.f32 %v3082_v32, 0.0 }
 0x3f5   : > { %3148 = vst [vmem:[%s4987_s20 + $0xf8] sm:$0xff] %v3116_v63 }
 0x3f6   : > { %3146 = vst [vmem:[%s4987_s20 + $0xe8] sm:$0xff] %v3114_v0 }
 0x3f7 PF: > { %s17_s24 = sadd.s32 1, %s4124_s24  }
 0x3f8   : > { %p14_p4 = scmp.ge.s32.totalorder %s17_s24, 4  }
 0x3fa   :  { %16 = sbr.rel (!%p14_p4) target bundleno = 1 (0x1), region = 81 }

</bundles_post_ra>
